<compile_context>
chip_gen: v5e
topology: v5e:2x2
jax: 0.10.0
libtpu: 0.0.40
codegen_flags: <defaults>
</compile_context>

<pallas_src>
import math

import jax
import jax.numpy as jnp
from jax import lax
from jax.experimental import pallas as pl
from jax.experimental.pallas import tpu as pltpu


_VMEM = pl.BlockSpec(memory_space=pltpu.MemorySpace.VMEM)


# ---------------------------------------------------------------------------
# Fused Pallas kernel: num_layers LSTM (wavefronted) + Linear(hidden, 1)
# ---------------------------------------------------------------------------
def _fused_lstm_fc_kernel(x_ref, w_ih0_ref, w_hh0_ref, w_ih_r_ref, w_hh_r_ref,
                          b_ref, fc_w_ref, fc_b_ref, out_ref, gates_sc):
    """Fused multi-layer LSTM + FC (wavefront over layers x time).

    x_ref:      (T, BP, FP)     time-major input, batch/feature padded
    w_ih0_ref:  (FP, G)         layer-0 input->gates weights (G = 4*H, packed)
    w_hh0_ref:  (H, G)          layer-0 hidden->gates weights
    w_ih_r_ref: (L-1, H, G)     layer>=1 input(=h_{l-1})->gates weights
    w_hh_r_ref: (L-1, H, G)     layer>=1 hidden->gates weights
    b_ref:      (L, 1, G)       b_ih + b_hh per layer
    fc_w_ref:   (H, LANE)       FC weight (real weights in column 0)
    fc_b_ref:   (1, LANE)       FC bias   (real bias    in column 0)
    out_ref:    (BP, LANE)      lane-dense FC output (column 0 is the result)
    gates_sc:   (T, BP, G)      VMEM scratch: layer-0 time-parallel projection
    """
    T, BP, FP = x_ref.shape
    H, G = w_hh0_ref.shape
    L = b_ref.shape[0]
    f32 = jnp.float32

    # ---- layer-0 time-parallel input projection: ONE big MXU matmul -------
    xin = x_ref[...].reshape(T * BP, FP)
    pre0 = jnp.dot(xin, w_ih0_ref[...], preferred_element_type=f32) + b_ref[0]
    gates_sc[...] = pre0.reshape(T, BP, G)

    def cell(gates, c_prev):
        # One full-vreg sigmoid + tanh (EUP), then static H-lane gate slices.
        sig = jax.nn.sigmoid(gates)
        th = jnp.tanh(gates)
        i = sig[:, 0 * H:1 * H]
        f = sig[:, 1 * H:2 * H]
        g = th[:, 2 * H:3 * H]
        o = sig[:, 3 * H:4 * H]
        c_new = f * c_prev + i * g
        h_new = o * jnp.tanh(c_new)
        return h_new, c_new

    zeros = jnp.zeros((BP, H), f32)
    h = [zeros] * L
    c = [zeros] * L

    # ---- wavefront: step s runs layer l at time t = s - l (fully static) --
    for s in range(T + L - 1):
        h_prev = list(h)          # states as of the previous wavefront step
        c_prev = list(c)
        for l in range(L):        # all active (l, t) pairs here are independent
            t = s - l
            if not (0 <= t < T):
                continue
            if l == 0:
                gates = gates_sc[t]
                if t > 0:         # h_{-1} == 0: skip the dead matmul at t == 0
                    gates = gates + jnp.dot(h_prev[0], w_hh0_ref[...],
                                            preferred_element_type=f32)
            else:
                gates = b_ref[l] + jnp.dot(h_prev[l - 1], w_ih_r_ref[l - 1],
                                           preferred_element_type=f32)
                if t > 0:
                    gates = gates + jnp.dot(h_prev[l], w_hh_r_ref[l - 1],
                                            preferred_element_type=f32)
            h[l], c[l] = cell(gates, c_prev[l])

    # ---- fused FC on the last layer's final hidden state -------------------
    out_ref[...] = (jnp.dot(h[L - 1], fc_w_ref[...], preferred_element_type=f32)
                    + fc_b_ref[...])


def _fused_forward(feat_tm, w_ih0, w_hh0, w_ih_r, w_hh_r, b, fc_w, fc_b):
    T, BP, _ = feat_tm.shape
    G = w_ih0.shape[1]
    lane = fc_w.shape[1]
    return pl.pallas_call(
        _fused_lstm_fc_kernel,
        out_shape=jax.ShapeDtypeStruct((BP, lane), jnp.float32),
        in_specs=[_VMEM] * 8,
        out_specs=_VMEM,
        scratch_shapes=[pltpu.VMEM((T, BP, G), jnp.float32)],
    )(feat_tm, w_ih0, w_hh0, w_ih_r, w_hh_r, b, fc_w, fc_b)


# ---------------------------------------------------------------------------
# Model wrapper (embedding gather / concat / padding are glue in plain JAX)
# ---------------------------------------------------------------------------
def lstm_model_forward(packed, x, busroute_id, businfo_unit_id):
    B, T, _ = x.shape
    br = packed["busroute_emb"][busroute_id]                    # (B, E)
    bi = packed["businfo_emb"][businfo_unit_id]                 # (B, E)
    br = jnp.broadcast_to(br[:, None, :], (B, T, br.shape[-1]))
    bi = jnp.broadcast_to(bi[:, None, :], (B, T, bi.shape[-1]))
    feat = jnp.concatenate([x, br, bi], axis=2).astype(jnp.float32)  # (B,T,F)
    F = feat.shape[-1]

    FP = packed["w_ih0"].shape[0]                # padded feature dim (=128)
    BP = max(8, ((B + 7) // 8) * 8)              # pad batch to sublanes

    # time-major, batch padded to 8 sublanes, features padded lane-dense
    feat_tm = jnp.zeros((T, BP, FP), jnp.float32)
    feat_tm = feat_tm.at[:, :B, :F].set(jnp.transpose(feat, (1, 0, 2)))

    out_p = _fused_forward(feat_tm, packed["w_ih0"], packed["w_hh0"],
                           packed["w_ih_r"], packed["w_hh_r"],
                           packed["b"], packed["fc_w"], packed["fc_b"])
    return out_p[:B, :1]                         # (B, 1)


# ---------------------------------------------------------------------------
# Parameter packing: PyTorch-shaped params -> gate-packed kernel params
# ---------------------------------------------------------------------------
def pack_params(params, hidden_size, lane=128):
    H = hidden_size
    G = 4 * H                                    # tight gate packing [i,f,g,o]
    layers = params["lstm"]
    L = len(layers)
    in_dim = layers[0]["w_ih"].shape[1]
    FP = ((max(in_dim, 1) + lane - 1) // lane) * lane
    assert in_dim <= FP

    # PyTorch w_ih/w_hh are (4H, in)/(4H, H) with gate blocks [i,f,g,o];
    # transposing gives exactly the tightly packed (in, 4H) layout we want.
    w_ih0 = jnp.zeros((FP, G), jnp.float32)
    w_ih0 = w_ih0.at[:in_dim, :].set(jnp.asarray(layers[0]["w_ih"], jnp.float32).T)
    w_hh0 = jnp.asarray(layers[0]["w_hh"], jnp.float32).T            # (H, G)

    b = jnp.stack([(lay["b_ih"] + lay["b_hh"]).astype(jnp.float32).reshape(1, G)
                   for lay in layers])                               # (L, 1, G)

    if L > 1:
        w_ih_r = jnp.stack([jnp.asarray(lay["w_ih"], jnp.float32).T
                            for lay in layers[1:]])                  # (L-1, H, G)
        w_hh_r = jnp.stack([jnp.asarray(lay["w_hh"], jnp.float32).T
                            for lay in layers[1:]])                  # (L-1, H, G)
    else:
        w_ih_r = jnp.zeros((1, H, G), jnp.float32)                   # unused
        w_hh_r = jnp.zeros((1, H, G), jnp.float32)

    fc_w = jnp.zeros((H, lane), jnp.float32).at[:, 0].set(
        jnp.asarray(params["fc_w"], jnp.float32)[0, :])
    fc_b = jnp.zeros((1, lane), jnp.float32).at[0, 0].set(
        jnp.asarray(params["fc_b"], jnp.float32)[0])

    return {
        "busroute_emb": params["busroute_emb"],
        "businfo_emb": params["businfo_emb"],
        "w_ih0": w_ih0,                          # (FP, G)
        "w_hh0": w_hh0,                          # (H,  G)
        "w_ih_r": w_ih_r,                        # (L-1, H, G)
        "w_hh_r": w_hh_r,                        # (L-1, H, G)
        "b": b,                                  # (L, 1, G)
        "fc_w": fc_w,                            # (H, 128)
        "fc_b": fc_b,                            # (1, 128)
    }


# ---------------------------------------------------------------------------
# Pure-JAX reference (PyTorch semantics) for the correctness check
# ---------------------------------------------------------------------------
def lstm_model_reference(params, x, busroute_id, businfo_unit_id):
    B, T, _ = x.shape
    br = params["busroute_emb"][busroute_id]
    bi = params["businfo_emb"][businfo_unit_id]
    br = jnp.broadcast_to(br[:, None, :], (B, T, br.shape[-1]))
    bi = jnp.broadcast_to(bi[:, None, :], (B, T, bi.shape[-1]))
    seq = jnp.concatenate([x, br, bi], axis=2).astype(jnp.float32)

    for layer in params["lstm"]:
        H = layer["w_hh"].shape[1]
        w_ih_t = layer["w_ih"].T
        w_hh_t = layer["w_hh"].T
        b = (layer["b_ih"] + layer["b_hh"])[None, :]
        h0 = jnp.zeros((B, H), jnp.float32)
        c0 = jnp.zeros((B, H), jnp.float32)

        def step(carry, x_t):
            h, c = carry
            gates = x_t @ w_ih_t + h @ w_hh_t + b
            i = jax.nn.sigmoid(gates[:, 0 * H:1 * H])
            f = jax.nn.sigmoid(gates[:, 1 * H:2 * H])
            g = jnp.tanh(gates[:, 2 * H:3 * H])
            o = jax.nn.sigmoid(gates[:, 3 * H:4 * H])
            c_new = f * c + i * g
            h_new = o * jnp.tanh(c_new)
            return (h_new, c_new), h_new

        (_, _), hs = lax.scan(step, (h0, c0), jnp.transpose(seq, (1, 0, 2)))
        seq = jnp.transpose(hs, (1, 0, 2))

    h_last = seq[:, -1, :]
    return h_last @ params["fc_w"].T + params["fc_b"][None, :]


# ---------------------------------------------------------------------------
# Deterministic parameter init (PyTorch-style uniform(-1/sqrt(H), 1/sqrt(H)))
# ---------------------------------------------------------------------------
def init_params(key, input_size, hidden_size, num_layers,
                busroute_vocab_size, businfo_vocab_size, embedding_dim):
    keys = jax.random.split(key, 4 + 4 * num_layers)
    params = {
        "busroute_emb": jax.random.normal(
            keys[0], (busroute_vocab_size, embedding_dim), jnp.float32),
        "businfo_emb": jax.random.normal(
            keys[1], (businfo_vocab_size, embedding_dim), jnp.float32),
    }
    k_lstm = 1.0 / math.sqrt(hidden_size)
    lstm_params = []
    in_dim = input_size + 2 * embedding_dim
    for l in range(num_layers):
        kw = keys[2 + 4 * l: 2 + 4 * (l + 1)]
        lstm_params.append({
            "w_ih": jax.random.uniform(kw[0], (4 * hidden_size, in_dim),
                                       jnp.float32, -k_lstm, k_lstm),
            "w_hh": jax.random.uniform(kw[1], (4 * hidden_size, hidden_size),
                                       jnp.float32, -k_lstm, k_lstm),
            "b_ih": jax.random.uniform(kw[2], (4 * hidden_size,),
                                       jnp.float32, -k_lstm, k_lstm),
            "b_hh": jax.random.uniform(kw[3], (4 * hidden_size,),
                                       jnp.float32, -k_lstm, k_lstm),
        })
        in_dim = hidden_size
    params["lstm"] = lstm_params

    k_fc = 1.0 / math.sqrt(hidden_size)
    params["fc_w"] = jax.random.uniform(keys[-2], (1, hidden_size),
                                        jnp.float32, -k_fc, k_fc)
    params["fc_b"] = jax.random.uniform(keys[-1], (1,),
                                        jnp.float32, -k_fc, k_fc)
    return params


# ---------------------------------------------------------------------------
if __name__ == "__main__":
    input_size = 4
    hidden_size = 32
    num_layers = 2
    busroute_vocab_size = 16
    businfo_vocab_size = 12
    embedding_dim = 8
    batch = 2
    seq_len = 8

    key = jax.random.PRNGKey(0)
    k_param, k_x, k_r, k_i = jax.random.split(key, 4)

    params = init_params(k_param, input_size, hidden_size, num_layers,
                         busroute_vocab_size, businfo_vocab_size, embedding_dim)
    packed = pack_params(params, hidden_size)

    x = jax.random.normal(k_x, (batch, seq_len, input_size), jnp.float32)
    busroute_id = jax.random.randint(k_r, (batch,), 0, busroute_vocab_size)
    businfo_unit_id = jax.random.randint(k_i, (batch,), 0, businfo_vocab_size)

    fwd = jax.jit(lstm_model_forward)
    out = jax.block_until_ready(fwd(packed, x, busroute_id, businfo_unit_id))

    ref = jax.block_until_ready(
        lstm_model_reference(params, x, busroute_id, businfo_unit_id))

    assert out.shape == (batch, 1), out.shape
    assert jnp.allclose(out, ref, atol=1e-4, rtol=1e-4), (out, ref)
    print("KERNEL_OK")
</pallas_src>

<mosaic_0001>
module attributes {stable_mosaic.version = 11 : i64} {
  func.func @_fused_lstm_fc_kernel(%arg0: memref<8x8x128xf32, #tpu.memory_space<vmem>>, %arg1: memref<128x128xf32, #tpu.memory_space<vmem>>, %arg2: memref<32x128xf32, #tpu.memory_space<vmem>>, %arg3: memref<1x32x128xf32, #tpu.memory_space<vmem>>, %arg4: memref<1x32x128xf32, #tpu.memory_space<vmem>>, %arg5: memref<2x1x128xf32, #tpu.memory_space<vmem>>, %arg6: memref<32x128xf32, #tpu.memory_space<vmem>>, %arg7: memref<1x128xf32, #tpu.memory_space<vmem>>, %arg8: memref<8x128xf32, #tpu.memory_space<vmem>>, %arg9: memref<8x8x128xf32, #tpu.memory_space<vmem>>) attributes {dimension_semantics = [], scalar_prefetch = 0 : i64, scratch_operands = 1 : i64, tpu.core_type = #tpu.core_type<tc>} {
    %c0 = arith.constant 0 : index
    %c0_0 = arith.constant 0 : index
    %c0_1 = arith.constant 0 : index
    %0 = vector.load %arg0[%c0, %c0_0, %c0_1] : memref<8x8x128xf32, #tpu.memory_space<vmem>>, vector<8x8x128xf32>
    %1 = vector.shape_cast %0 : vector<8x8x128xf32> to vector<64x128xf32>
    %c0_2 = arith.constant 0 : index
    %c0_3 = arith.constant 0 : index
    %2 = vector.load %arg1[%c0_2, %c0_3] : memref<128x128xf32, #tpu.memory_space<vmem>>, vector<128x128xf32>
    %cst = arith.constant dense<0.000000e+00> : vector<64x128xf32>
    %3 = tpu.matmul %1, %2, %cst {dimension_numbers = #tpu.dot_dimension_numbers<[1], [0], [0], [1], [0, 0, 1, 1], [], []>} : vector<64x128xf32>, vector<128x128xf32>, vector<64x128xf32> -> vector<64x128xf32>
    %c0_4 = arith.constant 0 : index
    %c0_5 = arith.constant 0 : index
    %c0_6 = arith.constant 0 : index
    %4 = vector.load %arg5[%c0_4, %c0_5, %c0_6] : memref<2x1x128xf32, #tpu.memory_space<vmem>>, vector<1x1x128xf32>
    %5 = vector.shape_cast %4 : vector<1x1x128xf32> to vector<1x128xf32>
    %6 = vector.broadcast %5 : vector<1x128xf32> to vector<64x128xf32>
    %7 = arith.addf %3, %6 : vector<64x128xf32>
    %8 = vector.shape_cast %7 : vector<64x128xf32> to vector<8x8x128xf32>
    %c0_7 = arith.constant 0 : index
    %c0_8 = arith.constant 0 : index
    %c0_9 = arith.constant 0 : index
    %9 = vector.load %arg9[%c0_7, %c0_8, %c0_9] : memref<8x8x128xf32, #tpu.memory_space<vmem>>, vector<8x8x128xf32>
    tpu.vector_store %arg9[%c0_7, %c0_8, %c0_9], %8 {strides = array<i32>} : memref<8x8x128xf32, #tpu.memory_space<vmem>>, vector<8x8x128xf32>,
    %cst_10 = arith.constant 0.000000e+00 : f32
    %10 = vector.broadcast %cst_10 : f32 to vector<8x32xf32>
    %c0_11 = arith.constant 0 : index
    %c0_12 = arith.constant 0 : index
    %c0_13 = arith.constant 0 : index
    %11 = vector.load %arg9[%c0_11, %c0_12, %c0_13] : memref<8x8x128xf32, #tpu.memory_space<vmem>>, vector<1x8x128xf32>
    %12 = vector.shape_cast %11 : vector<1x8x128xf32> to vector<8x128xf32>
    %13 = arith.negf %12 : vector<8x128xf32>
    %14 = math.exp %13 : vector<8x128xf32>
    %cst_14 = arith.constant 1.000000e+00 : f32
    %15 = vector.broadcast %cst_14 : f32 to vector<8x128xf32>
    %16 = arith.addf %15, %14 : vector<8x128xf32>
    %17 = arith.divf %15, %16 : vector<8x128xf32>
    %18 = math.tanh %12 : vector<8x128xf32>
    %19 = vector.extract_strided_slice %17 {offsets = [0, 0], sizes = [8, 32], strides = [1, 1]} : vector<8x128xf32> to vector<8x32xf32>
    %20 = vector.extract_strided_slice %17 {offsets = [0, 32], sizes = [8, 32], strides = [1, 1]} : vector<8x128xf32> to vector<8x32xf32>
    %21 = vector.extract_strided_slice %18 {offsets = [0, 64], sizes = [8, 32], strides = [1, 1]} : vector<8x128xf32> to vector<8x32xf32>
    %22 = vector.extract_strided_slice %17 {offsets = [0, 96], sizes = [8, 32], strides = [1, 1]} : vector<8x128xf32> to vector<8x32xf32>
    %23 = arith.mulf %20, %10 : vector<8x32xf32>
    %24 = arith.mulf %19, %21 : vector<8x32xf32>
    %25 = arith.addf %23, %24 : vector<8x32xf32>
    %26 = math.tanh %25 : vector<8x32xf32>
    %27 = arith.mulf %22, %26 : vector<8x32xf32>
    %c1 = arith.constant 1 : index
    %c0_15 = arith.constant 0 : index
    %c0_16 = arith.constant 0 : index
    %28 = vector.load %arg9[%c1, %c0_15, %c0_16] : memref<8x8x128xf32, #tpu.memory_space<vmem>>, vector<1x8x128xf32>
    %29 = vector.shape_cast %28 : vector<1x8x128xf32> to vector<8x128xf32>
    %c0_17 = arith.constant 0 : index
    %c0_18 = arith.constant 0 : index
    %30 = vector.load %arg2[%c0_17, %c0_18] : memref<32x128xf32, #tpu.memory_space<vmem>>, vector<32x128xf32>
    %cst_19 = arith.constant dense<0.000000e+00> : vector<8x128xf32>
    %31 = tpu.matmul %27, %30, %cst_19 {dimension_numbers = #tpu.dot_dimension_numbers<[1], [0], [0], [1], [0, 0, 1, 1], [], []>} : vector<8x32xf32>, vector<32x128xf32>, vector<8x128xf32> -> vector<8x128xf32>
    %32 = arith.addf %29, %31 : vector<8x128xf32>
    %33 = arith.negf %32 : vector<8x128xf32>
    %34 = math.exp %33 : vector<8x128xf32>
    %cst_20 = arith.constant 1.000000e+00 : f32
    %35 = vector.broadcast %cst_20 : f32 to vector<8x128xf32>
    %36 = arith.addf %35, %34 : vector<8x128xf32>
    %37 = arith.divf %35, %36 : vector<8x128xf32>
    %38 = math.tanh %32 : vector<8x128xf32>
    %39 = vector.extract_strided_slice %37 {offsets = [0, 0], sizes = [8, 32], strides = [1, 1]} : vector<8x128xf32> to vector<8x32xf32>
    %40 = vector.extract_strided_slice %37 {offsets = [0, 32], sizes = [8, 32], strides = [1, 1]} : vector<8x128xf32> to vector<8x32xf32>
    %41 = vector.extract_strided_slice %38 {offsets = [0, 64], sizes = [8, 32], strides = [1, 1]} : vector<8x128xf32> to vector<8x32xf32>
    %42 = vector.extract_strided_slice %37 {offsets = [0, 96], sizes = [8, 32], strides = [1, 1]} : vector<8x128xf32> to vector<8x32xf32>
    %43 = arith.mulf %40, %25 : vector<8x32xf32>
    %44 = arith.mulf %39, %41 : vector<8x32xf32>
    %45 = arith.addf %43, %44 : vector<8x32xf32>
    %46 = math.tanh %45 : vector<8x32xf32>
    %47 = arith.mulf %42, %46 : vector<8x32xf32>
    %c1_21 = arith.constant 1 : index
    %c0_22 = arith.constant 0 : index
    %c0_23 = arith.constant 0 : index
    %48 = vector.load %arg5[%c1_21, %c0_22, %c0_23] : memref<2x1x128xf32, #tpu.memory_space<vmem>>, vector<1x1x128xf32>
    %49 = vector.shape_cast %48 : vector<1x1x128xf32> to vector<1x128xf32>
    %c0_24 = arith.constant 0 : index
    %c0_25 = arith.constant 0 : index
    %c0_26 = arith.constant 0 : index
    %50 = vector.load %arg3[%c0_24, %c0_25, %c0_26] : memref<1x32x128xf32, #tpu.memory_space<vmem>>, vector<1x32x128xf32>
    %51 = vector.shape_cast %50 : vector<1x32x128xf32> to vector<32x128xf32>
    %cst_27 = arith.constant dense<0.000000e+00> : vector<8x128xf32>
    %52 = tpu.matmul %27, %51, %cst_27 {dimension_numbers = #tpu.dot_dimension_numbers<[1], [0], [0], [1], [0, 0, 1, 1], [], []>} : vector<8x32xf32>, vector<32x128xf32>, vector<8x128xf32> -> vector<8x128xf32>
    %53 = vector.broadcast %49 : vector<1x128xf32> to vector<8x128xf32>
    %54 = arith.addf %53, %52 : vector<8x128xf32>
    %55 = arith.negf %54 : vector<8x128xf32>
    %56 = math.exp %55 : vector<8x128xf32>
    %cst_28 = arith.constant 1.000000e+00 : f32
    %57 = vector.broadcast %cst_28 : f32 to vector<8x128xf32>
    %58 = arith.addf %57, %56 : vector<8x128xf32>
    %59 = arith.divf %57, %58 : vector<8x128xf32>
    %60 = math.tanh %54 : vector<8x128xf32>
    %61 = vector.extract_strided_slice %59 {offsets = [0, 0], sizes = [8, 32], strides = [1, 1]} : vector<8x128xf32> to vector<8x32xf32>
    %62 = vector.extract_strided_slice %59 {offsets = [0, 32], sizes = [8, 32], strides = [1, 1]} : vector<8x128xf32> to vector<8x32xf32>
    %63 = vector.extract_strided_slice %60 {offsets = [0, 64], sizes = [8, 32], strides = [1, 1]} : vector<8x128xf32> to vector<8x32xf32>
    %64 = vector.extract_strided_slice %59 {offsets = [0, 96], sizes = [8, 32], strides = [1, 1]} : vector<8x128xf32> to vector<8x32xf32>
    %65 = arith.mulf %62, %10 : vector<8x32xf32>
    %66 = arith.mulf %61, %63 : vector<8x32xf32>
    %67 = arith.addf %65, %66 : vector<8x32xf32>
    %68 = math.tanh %67 : vector<8x32xf32>
    %69 = arith.mulf %64, %68 : vector<8x32xf32>
    %c2 = arith.constant 2 : index
    %c0_29 = arith.constant 0 : index
    %c0_30 = arith.constant 0 : index
    %70 = vector.load %arg9[%c2, %c0_29, %c0_30] : memref<8x8x128xf32, #tpu.memory_space<vmem>>, vector<1x8x128xf32>
    %71 = vector.shape_cast %70 : vector<1x8x128xf32> to vector<8x128xf32>
    %c0_31 = arith.constant 0 : index
    %c0_32 = arith.constant 0 : index
    %72 = vector.load %arg2[%c0_31, %c0_32] : memref<32x128xf32, #tpu.memory_space<vmem>>, vector<32x128xf32>
    %cst_33 = arith.constant dense<0.000000e+00> : vector<8x128xf32>
    %73 = tpu.matmul %47, %72, %cst_33 {dimension_numbers = #tpu.dot_dimension_numbers<[1], [0], [0], [1], [0, 0, 1, 1], [], []>} : vector<8x32xf32>, vector<32x128xf32>, vector<8x128xf32> -> vector<8x128xf32>
    %74 = arith.addf %71, %73 : vector<8x128xf32>
    %75 = arith.negf %74 : vector<8x128xf32>
    %76 = math.exp %75 : vector<8x128xf32>
    %cst_34 = arith.constant 1.000000e+00 : f32
    %77 = vector.broadcast %cst_34 : f32 to vector<8x128xf32>
    %78 = arith.addf %77, %76 : vector<8x128xf32>
    %79 = arith.divf %77, %78 : vector<8x128xf32>
    %80 = math.tanh %74 : vector<8x128xf32>
    %81 = vector.extract_strided_slice %79 {offsets = [0, 0], sizes = [8, 32], strides = [1, 1]} : vector<8x128xf32> to vector<8x32xf32>
    %82 = vector.extract_strided_slice %79 {offsets = [0, 32], sizes = [8, 32], strides = [1, 1]} : vector<8x128xf32> to vector<8x32xf32>
    %83 = vector.extract_strided_slice %80 {offsets = [0, 64], sizes = [8, 32], strides = [1, 1]} : vector<8x128xf32> to vector<8x32xf32>
    %84 = vector.extract_strided_slice %79 {offsets = [0, 96], sizes = [8, 32], strides = [1, 1]} : vector<8x128xf32> to vector<8x32xf32>
    %85 = arith.mulf %82, %45 : vector<8x32xf32>
    %86 = arith.mulf %81, %83 : vector<8x32xf32>
    %87 = arith.addf %85, %86 : vector<8x32xf32>
    %88 = math.tanh %87 : vector<8x32xf32>
    %89 = arith.mulf %84, %88 : vector<8x32xf32>
    %c1_35 = arith.constant 1 : index
    %c0_36 = arith.constant 0 : index
    %c0_37 = arith.constant 0 : index
    %90 = vector.load %arg5[%c1_35, %c0_36, %c0_37] : memref<2x1x128xf32, #tpu.memory_space<vmem>>, vector<1x1x128xf32>
    %91 = vector.shape_cast %90 : vector<1x1x128xf32> to vector<1x128xf32>
    %c0_38 = arith.constant 0 : index
    %c0_39 = arith.constant 0 : index
    %c0_40 = arith.constant 0 : index
    %92 = vector.load %arg3[%c0_38, %c0_39, %c0_40] : memref<1x32x128xf32, #tpu.memory_space<vmem>>, vector<1x32x128xf32>
    %93 = vector.shape_cast %92 : vector<1x32x128xf32> to vector<32x128xf32>
    %cst_41 = arith.constant dense<0.000000e+00> : vector<8x128xf32>
    %94 = tpu.matmul %47, %93, %cst_41 {dimension_numbers = #tpu.dot_dimension_numbers<[1], [0], [0], [1], [0, 0, 1, 1], [], []>} : vector<8x32xf32>, vector<32x128xf32>, vector<8x128xf32> -> vector<8x128xf32>
    %95 = vector.broadcast %91 : vector<1x128xf32> to vector<8x128xf32>
    %96 = arith.addf %95, %94 : vector<8x128xf32>
    %c0_42 = arith.constant 0 : index
    %c0_43 = arith.constant 0 : index
    %c0_44 = arith.constant 0 : index
    %97 = vector.load %arg4[%c0_42, %c0_43, %c0_44] : memref<1x32x128xf32, #tpu.memory_space<vmem>>, vector<1x32x128xf32>
    %98 = vector.shape_cast %97 : vector<1x32x128xf32> to vector<32x128xf32>
    %cst_45 = arith.constant dense<0.000000e+00> : vector<8x128xf32>
    %99 = tpu.matmul %69, %98, %cst_45 {dimension_numbers = #tpu.dot_dimension_numbers<[1], [0], [0], [1], [0, 0, 1, 1], [], []>} : vector<8x32xf32>, vector<32x128xf32>, vector<8x128xf32> -> vector<8x128xf32>
    %100 = arith.addf %96, %99 : vector<8x128xf32>
    %101 = arith.negf %100 : vector<8x128xf32>
    %102 = math.exp %101 : vector<8x128xf32>
    %cst_46 = arith.constant 1.000000e+00 : f32
    %103 = vector.broadcast %cst_46 : f32 to vector<8x128xf32>
    %104 = arith.addf %103, %102 : vector<8x128xf32>
    %105 = arith.divf %103, %104 : vector<8x128xf32>
    %106 = math.tanh %100 : vector<8x128xf32>
    %107 = vector.extract_strided_slice %105 {offsets = [0, 0], sizes = [8, 32], strides = [1, 1]} : vector<8x128xf32> to vector<8x32xf32>
    %108 = vector.extract_strided_slice %105 {offsets = [0, 32], sizes = [8, 32], strides = [1, 1]} : vector<8x128xf32> to vector<8x32xf32>
    %109 = vector.extract_strided_slice %106 {offsets = [0, 64], sizes = [8, 32], strides = [1, 1]} : vector<8x128xf32> to vector<8x32xf32>
    %110 = vector.extract_strided_slice %105 {offsets = [0, 96], sizes = [8, 32], strides = [1, 1]} : vector<8x128xf32> to vector<8x32xf32>
    %111 = arith.mulf %108, %67 : vector<8x32xf32>
    %112 = arith.mulf %107, %109 : vector<8x32xf32>
    %113 = arith.addf %111, %112 : vector<8x32xf32>
    %114 = math.tanh %113 : vector<8x32xf32>
    %115 = arith.mulf %110, %114 : vector<8x32xf32>
    %c3 = arith.constant 3 : index
    %c0_47 = arith.constant 0 : index
    %c0_48 = arith.constant 0 : index
    %116 = vector.load %arg9[%c3, %c0_47, %c0_48] : memref<8x8x128xf32, #tpu.memory_space<vmem>>, vector<1x8x128xf32>
    %117 = vector.shape_cast %116 : vector<1x8x128xf32> to vector<8x128xf32>
    %c0_49 = arith.constant 0 : index
    %c0_50 = arith.constant 0 : index
    %118 = vector.load %arg2[%c0_49, %c0_50] : memref<32x128xf32, #tpu.memory_space<vmem>>, vector<32x128xf32>
    %cst_51 = arith.constant dense<0.000000e+00> : vector<8x128xf32>
    %119 = tpu.matmul %89, %118, %cst_51 {dimension_numbers = #tpu.dot_dimension_numbers<[1], [0], [0], [1], [0, 0, 1, 1], [], []>} : vector<8x32xf32>, vector<32x128xf32>, vector<8x128xf32> -> vector<8x128xf32>
    %120 = arith.addf %117, %119 : vector<8x128xf32>
    %121 = arith.negf %120 : vector<8x128xf32>
    %122 = math.exp %121 : vector<8x128xf32>
    %cst_52 = arith.constant 1.000000e+00 : f32
    %123 = vector.broadcast %cst_52 : f32 to vector<8x128xf32>
    %124 = arith.addf %123, %122 : vector<8x128xf32>
    %125 = arith.divf %123, %124 : vector<8x128xf32>
    %126 = math.tanh %120 : vector<8x128xf32>
    %127 = vector.extract_strided_slice %125 {offsets = [0, 0], sizes = [8, 32], strides = [1, 1]} : vector<8x128xf32> to vector<8x32xf32>
    %128 = vector.extract_strided_slice %125 {offsets = [0, 32], sizes = [8, 32], strides = [1, 1]} : vector<8x128xf32> to vector<8x32xf32>
    %129 = vector.extract_strided_slice %126 {offsets = [0, 64], sizes = [8, 32], strides = [1, 1]} : vector<8x128xf32> to vector<8x32xf32>
    %130 = vector.extract_strided_slice %125 {offsets = [0, 96], sizes = [8, 32], strides = [1, 1]} : vector<8x128xf32> to vector<8x32xf32>
    %131 = arith.mulf %128, %87 : vector<8x32xf32>
    %132 = arith.mulf %127, %129 : vector<8x32xf32>
    %133 = arith.addf %131, %132 : vector<8x32xf32>
    %134 = math.tanh %133 : vector<8x32xf32>
    %135 = arith.mulf %130, %134 : vector<8x32xf32>
    %c1_53 = arith.constant 1 : index
    %c0_54 = arith.constant 0 : index
    %c0_55 = arith.constant 0 : index
    %136 = vector.load %arg5[%c1_53, %c0_54, %c0_55] : memref<2x1x128xf32, #tpu.memory_space<vmem>>, vector<1x1x128xf32>
    %137 = vector.shape_cast %136 : vector<1x1x128xf32> to vector<1x128xf32>
    %c0_56 = arith.constant 0 : index
    %c0_57 = arith.constant 0 : index
    %c0_58 = arith.constant 0 : index
    %138 = vector.load %arg3[%c0_56, %c0_57, %c0_58] : memref<1x32x128xf32, #tpu.memory_space<vmem>>, vector<1x32x128xf32>
    %139 = vector.shape_cast %138 : vector<1x32x128xf32> to vector<32x128xf32>
    %cst_59 = arith.constant dense<0.000000e+00> : vector<8x128xf32>
    %140 = tpu.matmul %89, %139, %cst_59 {dimension_numbers = #tpu.dot_dimension_numbers<[1], [0], [0], [1], [0, 0, 1, 1], [], []>} : vector<8x32xf32>, vector<32x128xf32>, vector<8x128xf32> -> vector<8x128xf32>
    %141 = vector.broadcast %137 : vector<1x128xf32> to vector<8x128xf32>
    %142 = arith.addf %141, %140 : vector<8x128xf32>
    %c0_60 = arith.constant 0 : index
    %c0_61 = arith.constant 0 : index
    %c0_62 = arith.constant 0 : index
    %143 = vector.load %arg4[%c0_60, %c0_61, %c0_62] : memref<1x32x128xf32, #tpu.memory_space<vmem>>, vector<1x32x128xf32>
    %144 = vector.shape_cast %143 : vector<1x32x128xf32> to vector<32x128xf32>
    %cst_63 = arith.constant dense<0.000000e+00> : vector<8x128xf32>
    %145 = tpu.matmul %115, %144, %cst_63 {dimension_numbers = #tpu.dot_dimension_numbers<[1], [0], [0], [1], [0, 0, 1, 1], [], []>} : vector<8x32xf32>, vector<32x128xf32>, vector<8x128xf32> -> vector<8x128xf32>
    %146 = arith.addf %142, %145 : vector<8x128xf32>
    %147 = arith.negf %146 : vector<8x128xf32>
    %148 = math.exp %147 : vector<8x128xf32>
    %cst_64 = arith.constant 1.000000e+00 : f32
    %149 = vector.broadcast %cst_64 : f32 to vector<8x128xf32>
    %150 = arith.addf %149, %148 : vector<8x128xf32>
    %151 = arith.divf %149, %150 : vector<8x128xf32>
    %152 = math.tanh %146 : vector<8x128xf32>
    %153 = vector.extract_strided_slice %151 {offsets = [0, 0], sizes = [8, 32], strides = [1, 1]} : vector<8x128xf32> to vector<8x32xf32>
    %154 = vector.extract_strided_slice %151 {offsets = [0, 32], sizes = [8, 32], strides = [1, 1]} : vector<8x128xf32> to vector<8x32xf32>
    %155 = vector.extract_strided_slice %152 {offsets = [0, 64], sizes = [8, 32], strides = [1, 1]} : vector<8x128xf32> to vector<8x32xf32>
    %156 = vector.extract_strided_slice %151 {offsets = [0, 96], sizes = [8, 32], strides = [1, 1]} : vector<8x128xf32> to vector<8x32xf32>
    %157 = arith.mulf %154, %113 : vector<8x32xf32>
    %158 = arith.mulf %153, %155 : vector<8x32xf32>
    %159 = arith.addf %157, %158 : vector<8x32xf32>
    %160 = math.tanh %159 : vector<8x32xf32>
    %161 = arith.mulf %156, %160 : vector<8x32xf32>
    %c4 = arith.constant 4 : index
    %c0_65 = arith.constant 0 : index
    %c0_66 = arith.constant 0 : index
    %162 = vector.load %arg9[%c4, %c0_65, %c0_66] : memref<8x8x128xf32, #tpu.memory_space<vmem>>, vector<1x8x128xf32>
    %163 = vector.shape_cast %162 : vector<1x8x128xf32> to vector<8x128xf32>
    %c0_67 = arith.constant 0 : index
    %c0_68 = arith.constant 0 : index
    %164 = vector.load %arg2[%c0_67, %c0_68] : memref<32x128xf32, #tpu.memory_space<vmem>>, vector<32x128xf32>
    %cst_69 = arith.constant dense<0.000000e+00> : vector<8x128xf32>
    %165 = tpu.matmul %135, %164, %cst_69 {dimension_numbers = #tpu.dot_dimension_numbers<[1], [0], [0], [1], [0, 0, 1, 1], [], []>} : vector<8x32xf32>, vector<32x128xf32>, vector<8x128xf32> -> vector<8x128xf32>
    %166 = arith.addf %163, %165 : vector<8x128xf32>
    %167 = arith.negf %166 : vector<8x128xf32>
    %168 = math.exp %167 : vector<8x128xf32>
    %cst_70 = arith.constant 1.000000e+00 : f32
    %169 = vector.broadcast %cst_70 : f32 to vector<8x128xf32>
    %170 = arith.addf %169, %168 : vector<8x128xf32>
    %171 = arith.divf %169, %170 : vector<8x128xf32>
    %172 = math.tanh %166 : vector<8x128xf32>
    %173 = vector.extract_strided_slice %171 {offsets = [0, 0], sizes = [8, 32], strides = [1, 1]} : vector<8x128xf32> to vector<8x32xf32>
    %174 = vector.extract_strided_slice %171 {offsets = [0, 32], sizes = [8, 32], strides = [1, 1]} : vector<8x128xf32> to vector<8x32xf32>
    %175 = vector.extract_strided_slice %172 {offsets = [0, 64], sizes = [8, 32], strides = [1, 1]} : vector<8x128xf32> to vector<8x32xf32>
    %176 = vector.extract_strided_slice %171 {offsets = [0, 96], sizes = [8, 32], strides = [1, 1]} : vector<8x128xf32> to vector<8x32xf32>
    %177 = arith.mulf %174, %133 : vector<8x32xf32>
    %178 = arith.mulf %173, %175 : vector<8x32xf32>
    %179 = arith.addf %177, %178 : vector<8x32xf32>
    %180 = math.tanh %179 : vector<8x32xf32>
    %181 = arith.mulf %176, %180 : vector<8x32xf32>
    %c1_71 = arith.constant 1 : index
    %c0_72 = arith.constant 0 : index
    %c0_73 = arith.constant 0 : index
    %182 = vector.load %arg5[%c1_71, %c0_72, %c0_73] : memref<2x1x128xf32, #tpu.memory_space<vmem>>, vector<1x1x128xf32>
    %183 = vector.shape_cast %182 : vector<1x1x128xf32> to vector<1x128xf32>
    %c0_74 = arith.constant 0 : index
    %c0_75 = arith.constant 0 : index
    %c0_76 = arith.constant 0 : index
    %184 = vector.load %arg3[%c0_74, %c0_75, %c0_76] : memref<1x32x128xf32, #tpu.memory_space<vmem>>, vector<1x32x128xf32>
    %185 = vector.shape_cast %184 : vector<1x32x128xf32> to vector<32x128xf32>
    %cst_77 = arith.constant dense<0.000000e+00> : vector<8x128xf32>
    %186 = tpu.matmul %135, %185, %cst_77 {dimension_numbers = #tpu.dot_dimension_numbers<[1], [0], [0], [1], [0, 0, 1, 1], [], []>} : vector<8x32xf32>, vector<32x128xf32>, vector<8x128xf32> -> vector<8x128xf32>
    %187 = vector.broadcast %183 : vector<1x128xf32> to vector<8x128xf32>
    %188 = arith.addf %187, %186 : vector<8x128xf32>
    %c0_78 = arith.constant 0 : index
    %c0_79 = arith.constant 0 : index
    %c0_80 = arith.constant 0 : index
    %189 = vector.load %arg4[%c0_78, %c0_79, %c0_80] : memref<1x32x128xf32, #tpu.memory_space<vmem>>, vector<1x32x128xf32>
    %190 = vector.shape_cast %189 : vector<1x32x128xf32> to vector<32x128xf32>
    %cst_81 = arith.constant dense<0.000000e+00> : vector<8x128xf32>
    %191 = tpu.matmul %161, %190, %cst_81 {dimension_numbers = #tpu.dot_dimension_numbers<[1], [0], [0], [1], [0, 0, 1, 1], [], []>} : vector<8x32xf32>, vector<32x128xf32>, vector<8x128xf32> -> vector<8x128xf32>
    %192 = arith.addf %188, %191 : vector<8x128xf32>
    %193 = arith.negf %192 : vector<8x128xf32>
    %194 = math.exp %193 : vector<8x128xf32>
    %cst_82 = arith.constant 1.000000e+00 : f32
    %195 = vector.broadcast %cst_82 : f32 to vector<8x128xf32>
    %196 = arith.addf %195, %194 : vector<8x128xf32>
    %197 = arith.divf %195, %196 : vector<8x128xf32>
    %198 = math.tanh %192 : vector<8x128xf32>
    %199 = vector.extract_strided_slice %197 {offsets = [0, 0], sizes = [8, 32], strides = [1, 1]} : vector<8x128xf32> to vector<8x32xf32>
    %200 = vector.extract_strided_slice %197 {offsets = [0, 32], sizes = [8, 32], strides = [1, 1]} : vector<8x128xf32> to vector<8x32xf32>
    %201 = vector.extract_strided_slice %198 {offsets = [0, 64], sizes = [8, 32], strides = [1, 1]} : vector<8x128xf32> to vector<8x32xf32>
    %202 = vector.extract_strided_slice %197 {offsets = [0, 96], sizes = [8, 32], strides = [1, 1]} : vector<8x128xf32> to vector<8x32xf32>
    %203 = arith.mulf %200, %159 : vector<8x32xf32>
    %204 = arith.mulf %199, %201 : vector<8x32xf32>
    %205 = arith.addf %203, %204 : vector<8x32xf32>
    %206 = math.tanh %205 : vector<8x32xf32>
    %207 = arith.mulf %202, %206 : vector<8x32xf32>
    %c5 = arith.constant 5 : index
    %c0_83 = arith.constant 0 : index
    %c0_84 = arith.constant 0 : index
    %208 = vector.load %arg9[%c5, %c0_83, %c0_84] : memref<8x8x128xf32, #tpu.memory_space<vmem>>, vector<1x8x128xf32>
    %209 = vector.shape_cast %208 : vector<1x8x128xf32> to vector<8x128xf32>
    %c0_85 = arith.constant 0 : index
    %c0_86 = arith.constant 0 : index
    %210 = vector.load %arg2[%c0_85, %c0_86] : memref<32x128xf32, #tpu.memory_space<vmem>>, vector<32x128xf32>
    %cst_87 = arith.constant dense<0.000000e+00> : vector<8x128xf32>
    %211 = tpu.matmul %181, %210, %cst_87 {dimension_numbers = #tpu.dot_dimension_numbers<[1], [0], [0], [1], [0, 0, 1, 1], [], []>} : vector<8x32xf32>, vector<32x128xf32>, vector<8x128xf32> -> vector<8x128xf32>
    %212 = arith.addf %209, %211 : vector<8x128xf32>
    %213 = arith.negf %212 : vector<8x128xf32>
    %214 = math.exp %213 : vector<8x128xf32>
    %cst_88 = arith.constant 1.000000e+00 : f32
    %215 = vector.broadcast %cst_88 : f32 to vector<8x128xf32>
    %216 = arith.addf %215, %214 : vector<8x128xf32>
    %217 = arith.divf %215, %216 : vector<8x128xf32>
    %218 = math.tanh %212 : vector<8x128xf32>
    %219 = vector.extract_strided_slice %217 {offsets = [0, 0], sizes = [8, 32], strides = [1, 1]} : vector<8x128xf32> to vector<8x32xf32>
    %220 = vector.extract_strided_slice %217 {offsets = [0, 32], sizes = [8, 32], strides = [1, 1]} : vector<8x128xf32> to vector<8x32xf32>
    %221 = vector.extract_strided_slice %218 {offsets = [0, 64], sizes = [8, 32], strides = [1, 1]} : vector<8x128xf32> to vector<8x32xf32>
    %222 = vector.extract_strided_slice %217 {offsets = [0, 96], sizes = [8, 32], strides = [1, 1]} : vector<8x128xf32> to vector<8x32xf32>
    %223 = arith.mulf %220, %179 : vector<8x32xf32>
    %224 = arith.mulf %219, %221 : vector<8x32xf32>
    %225 = arith.addf %223, %224 : vector<8x32xf32>
    %226 = math.tanh %225 : vector<8x32xf32>
    %227 = arith.mulf %222, %226 : vector<8x32xf32>
    %c1_89 = arith.constant 1 : index
    %c0_90 = arith.constant 0 : index
    %c0_91 = arith.constant 0 : index
    %228 = vector.load %arg5[%c1_89, %c0_90, %c0_91] : memref<2x1x128xf32, #tpu.memory_space<vmem>>, vector<1x1x128xf32>
    %229 = vector.shape_cast %228 : vector<1x1x128xf32> to vector<1x128xf32>
    %c0_92 = arith.constant 0 : index
    %c0_93 = arith.constant 0 : index
    %c0_94 = arith.constant 0 : index
    %230 = vector.load %arg3[%c0_92, %c0_93, %c0_94] : memref<1x32x128xf32, #tpu.memory_space<vmem>>, vector<1x32x128xf32>
    %231 = vector.shape_cast %230 : vector<1x32x128xf32> to vector<32x128xf32>
    %cst_95 = arith.constant dense<0.000000e+00> : vector<8x128xf32>
    %232 = tpu.matmul %181, %231, %cst_95 {dimension_numbers = #tpu.dot_dimension_numbers<[1], [0], [0], [1], [0, 0, 1, 1], [], []>} : vector<8x32xf32>, vector<32x128xf32>, vector<8x128xf32> -> vector<8x128xf32>
    %233 = vector.broadcast %229 : vector<1x128xf32> to vector<8x128xf32>
    %234 = arith.addf %233, %232 : vector<8x128xf32>
    %c0_96 = arith.constant 0 : index
    %c0_97 = arith.constant 0 : index
    %c0_98 = arith.constant 0 : index
    %235 = vector.load %arg4[%c0_96, %c0_97, %c0_98] : memref<1x32x128xf32, #tpu.memory_space<vmem>>, vector<1x32x128xf32>
    %236 = vector.shape_cast %235 : vector<1x32x128xf32> to vector<32x128xf32>
    %cst_99 = arith.constant dense<0.000000e+00> : vector<8x128xf32>
    %237 = tpu.matmul %207, %236, %cst_99 {dimension_numbers = #tpu.dot_dimension_numbers<[1], [0], [0], [1], [0, 0, 1, 1], [], []>} : vector<8x32xf32>, vector<32x128xf32>, vector<8x128xf32> -> vector<8x128xf32>
    %238 = arith.addf %234, %237 : vector<8x128xf32>
    %239 = arith.negf %238 : vector<8x128xf32>
    %240 = math.exp %239 : vector<8x128xf32>
    %cst_100 = arith.constant 1.000000e+00 : f32
    %241 = vector.broadcast %cst_100 : f32 to vector<8x128xf32>
    %242 = arith.addf %241, %240 : vector<8x128xf32>
    %243 = arith.divf %241, %242 : vector<8x128xf32>
    %244 = math.tanh %238 : vector<8x128xf32>
    %245 = vector.extract_strided_slice %243 {offsets = [0, 0], sizes = [8, 32], strides = [1, 1]} : vector<8x128xf32> to vector<8x32xf32>
    %246 = vector.extract_strided_slice %243 {offsets = [0, 32], sizes = [8, 32], strides = [1, 1]} : vector<8x128xf32> to vector<8x32xf32>
    %247 = vector.extract_strided_slice %244 {offsets = [0, 64], sizes = [8, 32], strides = [1, 1]} : vector<8x128xf32> to vector<8x32xf32>
    %248 = vector.extract_strided_slice %243 {offsets = [0, 96], sizes = [8, 32], strides = [1, 1]} : vector<8x128xf32> to vector<8x32xf32>
    %249 = arith.mulf %246, %205 : vector<8x32xf32>
    %250 = arith.mulf %245, %247 : vector<8x32xf32>
    %251 = arith.addf %249, %250 : vector<8x32xf32>
    %252 = math.tanh %251 : vector<8x32xf32>
    %253 = arith.mulf %248, %252 : vector<8x32xf32>
    %c6 = arith.constant 6 : index
    %c0_101 = arith.constant 0 : index
    %c0_102 = arith.constant 0 : index
    %254 = vector.load %arg9[%c6, %c0_101, %c0_102] : memref<8x8x128xf32, #tpu.memory_space<vmem>>, vector<1x8x128xf32>
    %255 = vector.shape_cast %254 : vector<1x8x128xf32> to vector<8x128xf32>
    %c0_103 = arith.constant 0 : index
    %c0_104 = arith.constant 0 : index
    %256 = vector.load %arg2[%c0_103, %c0_104] : memref<32x128xf32, #tpu.memory_space<vmem>>, vector<32x128xf32>
    %cst_105 = arith.constant dense<0.000000e+00> : vector<8x128xf32>
    %257 = tpu.matmul %227, %256, %cst_105 {dimension_numbers = #tpu.dot_dimension_numbers<[1], [0], [0], [1], [0, 0, 1, 1], [], []>} : vector<8x32xf32>, vector<32x128xf32>, vector<8x128xf32> -> vector<8x128xf32>
    %258 = arith.addf %255, %257 : vector<8x128xf32>
    %259 = arith.negf %258 : vector<8x128xf32>
    %260 = math.exp %259 : vector<8x128xf32>
    %cst_106 = arith.constant 1.000000e+00 : f32
    %261 = vector.broadcast %cst_106 : f32 to vector<8x128xf32>
    %262 = arith.addf %261, %260 : vector<8x128xf32>
    %263 = arith.divf %261, %262 : vector<8x128xf32>
    %264 = math.tanh %258 : vector<8x128xf32>
    %265 = vector.extract_strided_slice %263 {offsets = [0, 0], sizes = [8, 32], strides = [1, 1]} : vector<8x128xf32> to vector<8x32xf32>
    %266 = vector.extract_strided_slice %263 {offsets = [0, 32], sizes = [8, 32], strides = [1, 1]} : vector<8x128xf32> to vector<8x32xf32>
    %267 = vector.extract_strided_slice %264 {offsets = [0, 64], sizes = [8, 32], strides = [1, 1]} : vector<8x128xf32> to vector<8x32xf32>
    %268 = vector.extract_strided_slice %263 {offsets = [0, 96], sizes = [8, 32], strides = [1, 1]} : vector<8x128xf32> to vector<8x32xf32>
    %269 = arith.mulf %266, %225 : vector<8x32xf32>
    %270 = arith.mulf %265, %267 : vector<8x32xf32>
    %271 = arith.addf %269, %270 : vector<8x32xf32>
    %272 = math.tanh %271 : vector<8x32xf32>
    %273 = arith.mulf %268, %272 : vector<8x32xf32>
    %c1_107 = arith.constant 1 : index
    %c0_108 = arith.constant 0 : index
    %c0_109 = arith.constant 0 : index
    %274 = vector.load %arg5[%c1_107, %c0_108, %c0_109] : memref<2x1x128xf32, #tpu.memory_space<vmem>>, vector<1x1x128xf32>
    %275 = vector.shape_cast %274 : vector<1x1x128xf32> to vector<1x128xf32>
    %c0_110 = arith.constant 0 : index
    %c0_111 = arith.constant 0 : index
    %c0_112 = arith.constant 0 : index
    %276 = vector.load %arg3[%c0_110, %c0_111, %c0_112] : memref<1x32x128xf32, #tpu.memory_space<vmem>>, vector<1x32x128xf32>
    %277 = vector.shape_cast %276 : vector<1x32x128xf32> to vector<32x128xf32>
    %cst_113 = arith.constant dense<0.000000e+00> : vector<8x128xf32>
    %278 = tpu.matmul %227, %277, %cst_113 {dimension_numbers = #tpu.dot_dimension_numbers<[1], [0], [0], [1], [0, 0, 1, 1], [], []>} : vector<8x32xf32>, vector<32x128xf32>, vector<8x128xf32> -> vector<8x128xf32>
    %279 = vector.broadcast %275 : vector<1x128xf32> to vector<8x128xf32>
    %280 = arith.addf %279, %278 : vector<8x128xf32>
    %c0_114 = arith.constant 0 : index
    %c0_115 = arith.constant 0 : index
    %c0_116 = arith.constant 0 : index
    %281 = vector.load %arg4[%c0_114, %c0_115, %c0_116] : memref<1x32x128xf32, #tpu.memory_space<vmem>>, vector<1x32x128xf32>
    %282 = vector.shape_cast %281 : vector<1x32x128xf32> to vector<32x128xf32>
    %cst_117 = arith.constant dense<0.000000e+00> : vector<8x128xf32>
    %283 = tpu.matmul %253, %282, %cst_117 {dimension_numbers = #tpu.dot_dimension_numbers<[1], [0], [0], [1], [0, 0, 1, 1], [], []>} : vector<8x32xf32>, vector<32x128xf32>, vector<8x128xf32> -> vector<8x128xf32>
    %284 = arith.addf %280, %283 : vector<8x128xf32>
    %285 = arith.negf %284 : vector<8x128xf32>
    %286 = math.exp %285 : vector<8x128xf32>
    %cst_118 = arith.constant 1.000000e+00 : f32
    %287 = vector.broadcast %cst_118 : f32 to vector<8x128xf32>
    %288 = arith.addf %287, %286 : vector<8x128xf32>
    %289 = arith.divf %287, %288 : vector<8x128xf32>
    %290 = math.tanh %284 : vector<8x128xf32>
    %291 = vector.extract_strided_slice %289 {offsets = [0, 0], sizes = [8, 32], strides = [1, 1]} : vector<8x128xf32> to vector<8x32xf32>
    %292 = vector.extract_strided_slice %289 {offsets = [0, 32], sizes = [8, 32], strides = [1, 1]} : vector<8x128xf32> to vector<8x32xf32>
    %293 = vector.extract_strided_slice %290 {offsets = [0, 64], sizes = [8, 32], strides = [1, 1]} : vector<8x128xf32> to vector<8x32xf32>
    %294 = vector.extract_strided_slice %289 {offsets = [0, 96], sizes = [8, 32], strides = [1, 1]} : vector<8x128xf32> to vector<8x32xf32>
    %295 = arith.mulf %292, %251 : vector<8x32xf32>
    %296 = arith.mulf %291, %293 : vector<8x32xf32>
    %297 = arith.addf %295, %296 : vector<8x32xf32>
    %298 = math.tanh %297 : vector<8x32xf32>
    %299 = arith.mulf %294, %298 : vector<8x32xf32>
    %c7 = arith.constant 7 : index
    %c0_119 = arith.constant 0 : index
    %c0_120 = arith.constant 0 : index
    %300 = vector.load %arg9[%c7, %c0_119, %c0_120] : memref<8x8x128xf32, #tpu.memory_space<vmem>>, vector<1x8x128xf32>
    %301 = vector.shape_cast %300 : vector<1x8x128xf32> to vector<8x128xf32>
    %c0_121 = arith.constant 0 : index
    %c0_122 = arith.constant 0 : index
    %302 = vector.load %arg2[%c0_121, %c0_122] : memref<32x128xf32, #tpu.memory_space<vmem>>, vector<32x128xf32>
    %cst_123 = arith.constant dense<0.000000e+00> : vector<8x128xf32>
    %303 = tpu.matmul %273, %302, %cst_123 {dimension_numbers = #tpu.dot_dimension_numbers<[1], [0], [0], [1], [0, 0, 1, 1], [], []>} : vector<8x32xf32>, vector<32x128xf32>, vector<8x128xf32> -> vector<8x128xf32>
    %304 = arith.addf %301, %303 : vector<8x128xf32>
    %305 = arith.negf %304 : vector<8x128xf32>
    %306 = math.exp %305 : vector<8x128xf32>
    %cst_124 = arith.constant 1.000000e+00 : f32
    %307 = vector.broadcast %cst_124 : f32 to vector<8x128xf32>
    %308 = arith.addf %307, %306 : vector<8x128xf32>
    %309 = arith.divf %307, %308 : vector<8x128xf32>
    %310 = math.tanh %304 : vector<8x128xf32>
    %311 = vector.extract_strided_slice %309 {offsets = [0, 0], sizes = [8, 32], strides = [1, 1]} : vector<8x128xf32> to vector<8x32xf32>
    %312 = vector.extract_strided_slice %309 {offsets = [0, 32], sizes = [8, 32], strides = [1, 1]} : vector<8x128xf32> to vector<8x32xf32>
    %313 = vector.extract_strided_slice %310 {offsets = [0, 64], sizes = [8, 32], strides = [1, 1]} : vector<8x128xf32> to vector<8x32xf32>
    %314 = vector.extract_strided_slice %309 {offsets = [0, 96], sizes = [8, 32], strides = [1, 1]} : vector<8x128xf32> to vector<8x32xf32>
    %315 = arith.mulf %312, %271 : vector<8x32xf32>
    %316 = arith.mulf %311, %313 : vector<8x32xf32>
    %317 = arith.addf %315, %316 : vector<8x32xf32>
    %318 = math.tanh %317 : vector<8x32xf32>
    %319 = arith.mulf %314, %318 : vector<8x32xf32>
    %c1_125 = arith.constant 1 : index
    %c0_126 = arith.constant 0 : index
    %c0_127 = arith.constant 0 : index
    %320 = vector.load %arg5[%c1_125, %c0_126, %c0_127] : memref<2x1x128xf32, #tpu.memory_space<vmem>>, vector<1x1x128xf32>
    %321 = vector.shape_cast %320 : vector<1x1x128xf32> to vector<1x128xf32>
    %c0_128 = arith.constant 0 : index
    %c0_129 = arith.constant 0 : index
    %c0_130 = arith.constant 0 : index
    %322 = vector.load %arg3[%c0_128, %c0_129, %c0_130] : memref<1x32x128xf32, #tpu.memory_space<vmem>>, vector<1x32x128xf32>
    %323 = vector.shape_cast %322 : vector<1x32x128xf32> to vector<32x128xf32>
    %cst_131 = arith.constant dense<0.000000e+00> : vector<8x128xf32>
    %324 = tpu.matmul %273, %323, %cst_131 {dimension_numbers = #tpu.dot_dimension_numbers<[1], [0], [0], [1], [0, 0, 1, 1], [], []>} : vector<8x32xf32>, vector<32x128xf32>, vector<8x128xf32> -> vector<8x128xf32>
    %325 = vector.broadcast %321 : vector<1x128xf32> to vector<8x128xf32>
    %326 = arith.addf %325, %324 : vector<8x128xf32>
    %c0_132 = arith.constant 0 : index
    %c0_133 = arith.constant 0 : index
    %c0_134 = arith.constant 0 : index
    %327 = vector.load %arg4[%c0_132, %c0_133, %c0_134] : memref<1x32x128xf32, #tpu.memory_space<vmem>>, vector<1x32x128xf32>
    %328 = vector.shape_cast %327 : vector<1x32x128xf32> to vector<32x128xf32>
    %cst_135 = arith.constant dense<0.000000e+00> : vector<8x128xf32>
    %329 = tpu.matmul %299, %328, %cst_135 {dimension_numbers = #tpu.dot_dimension_numbers<[1], [0], [0], [1], [0, 0, 1, 1], [], []>} : vector<8x32xf32>, vector<32x128xf32>, vector<8x128xf32> -> vector<8x128xf32>
    %330 = arith.addf %326, %329 : vector<8x128xf32>
    %331 = arith.negf %330 : vector<8x128xf32>
    %332 = math.exp %331 : vector<8x128xf32>
    %cst_136 = arith.constant 1.000000e+00 : f32
    %333 = vector.broadcast %cst_136 : f32 to vector<8x128xf32>
    %334 = arith.addf %333, %332 : vector<8x128xf32>
    %335 = arith.divf %333, %334 : vector<8x128xf32>
    %336 = math.tanh %330 : vector<8x128xf32>
    %337 = vector.extract_strided_slice %335 {offsets = [0, 0], sizes = [8, 32], strides = [1, 1]} : vector<8x128xf32> to vector<8x32xf32>
    %338 = vector.extract_strided_slice %335 {offsets = [0, 32], sizes = [8, 32], strides = [1, 1]} : vector<8x128xf32> to vector<8x32xf32>
    %339 = vector.extract_strided_slice %336 {offsets = [0, 64], sizes = [8, 32], strides = [1, 1]} : vector<8x128xf32> to vector<8x32xf32>
    %340 = vector.extract_strided_slice %335 {offsets = [0, 96], sizes = [8, 32], strides = [1, 1]} : vector<8x128xf32> to vector<8x32xf32>
    %341 = arith.mulf %338, %297 : vector<8x32xf32>
    %342 = arith.mulf %337, %339 : vector<8x32xf32>
    %343 = arith.addf %341, %342 : vector<8x32xf32>
    %344 = math.tanh %343 : vector<8x32xf32>
    %345 = arith.mulf %340, %344 : vector<8x32xf32>
    %c1_137 = arith.constant 1 : index
    %c0_138 = arith.constant 0 : index
    %c0_139 = arith.constant 0 : index
    %346 = vector.load %arg5[%c1_137, %c0_138, %c0_139] : memref<2x1x128xf32, #tpu.memory_space<vmem>>, vector<1x1x128xf32>
    %347 = vector.shape_cast %346 : vector<1x1x128xf32> to vector<1x128xf32>
    %c0_140 = arith.constant 0 : index
    %c0_141 = arith.constant 0 : index
    %c0_142 = arith.constant 0 : index
    %348 = vector.load %arg3[%c0_140, %c0_141, %c0_142] : memref<1x32x128xf32, #tpu.memory_space<vmem>>, vector<1x32x128xf32>
    %349 = vector.shape_cast %348 : vector<1x32x128xf32> to vector<32x128xf32>
    %cst_143 = arith.constant dense<0.000000e+00> : vector<8x128xf32>
    %350 = tpu.matmul %319, %349, %cst_143 {dimension_numbers = #tpu.dot_dimension_numbers<[1], [0], [0], [1], [0, 0, 1, 1], [], []>} : vector<8x32xf32>, vector<32x128xf32>, vector<8x128xf32> -> vector<8x128xf32>
    %351 = vector.broadcast %347 : vector<1x128xf32> to vector<8x128xf32>
    %352 = arith.addf %351, %350 : vector<8x128xf32>
    %c0_144 = arith.constant 0 : index
    %c0_145 = arith.constant 0 : index
    %c0_146 = arith.constant 0 : index
    %353 = vector.load %arg4[%c0_144, %c0_145, %c0_146] : memref<1x32x128xf32, #tpu.memory_space<vmem>>, vector<1x32x128xf32>
    %354 = vector.shape_cast %353 : vector<1x32x128xf32> to vector<32x128xf32>
    %cst_147 = arith.constant dense<0.000000e+00> : vector<8x128xf32>
    %355 = tpu.matmul %345, %354, %cst_147 {dimension_numbers = #tpu.dot_dimension_numbers<[1], [0], [0], [1], [0, 0, 1, 1], [], []>} : vector<8x32xf32>, vector<32x128xf32>, vector<8x128xf32> -> vector<8x128xf32>
    %356 = arith.addf %352, %355 : vector<8x128xf32>
    %357 = arith.negf %356 : vector<8x128xf32>
    %358 = math.exp %357 : vector<8x128xf32>
    %cst_148 = arith.constant 1.000000e+00 : f32
    %359 = vector.broadcast %cst_148 : f32 to vector<8x128xf32>
    %360 = arith.addf %359, %358 : vector<8x128xf32>
    %361 = arith.divf %359, %360 : vector<8x128xf32>
    %362 = math.tanh %356 : vector<8x128xf32>
    %363 = vector.extract_strided_slice %361 {offsets = [0, 0], sizes = [8, 32], strides = [1, 1]} : vector<8x128xf32> to vector<8x32xf32>
    %364 = vector.extract_strided_slice %361 {offsets = [0, 32], sizes = [8, 32], strides = [1, 1]} : vector<8x128xf32> to vector<8x32xf32>
    %365 = vector.extract_strided_slice %362 {offsets = [0, 64], sizes = [8, 32], strides = [1, 1]} : vector<8x128xf32> to vector<8x32xf32>
    %366 = vector.extract_strided_slice %361 {offsets = [0, 96], sizes = [8, 32], strides = [1, 1]} : vector<8x128xf32> to vector<8x32xf32>
    %367 = arith.mulf %364, %343 : vector<8x32xf32>
    %368 = arith.mulf %363, %365 : vector<8x32xf32>
    %369 = arith.addf %367, %368 : vector<8x32xf32>
    %370 = math.tanh %369 : vector<8x32xf32>
    %371 = arith.mulf %366, %370 : vector<8x32xf32>
    %c0_149 = arith.constant 0 : index
    %c0_150 = arith.constant 0 : index
    %372 = vector.load %arg6[%c0_149, %c0_150] : memref<32x128xf32, #tpu.memory_space<vmem>>, vector<32x128xf32>
    %cst_151 = arith.constant dense<0.000000e+00> : vector<8x128xf32>
    %373 = tpu.matmul %371, %372, %cst_151 {dimension_numbers = #tpu.dot_dimension_numbers<[1], [0], [0], [1], [0, 0, 1, 1], [], []>} : vector<8x32xf32>, vector<32x128xf32>, vector<8x128xf32> -> vector<8x128xf32>
    %c0_152 = arith.constant 0 : index
    %c0_153 = arith.constant 0 : index
    %374 = vector.load %arg7[%c0_152, %c0_153] : memref<1x128xf32, #tpu.memory_space<vmem>>, vector<1x128xf32>
    %375 = vector.broadcast %374 : vector<1x128xf32> to vector<8x128xf32>
    %376 = arith.addf %373, %375 : vector<8x128xf32>
    %c0_154 = arith.constant 0 : index
    %c0_155 = arith.constant 0 : index
    %377 = vector.load %arg8[%c0_154, %c0_155] : memref<8x128xf32, #tpu.memory_space<vmem>>, vector<8x128xf32>
    tpu.vector_store %arg8[%c0_154, %c0_155], %376 {strides = array<i32>} : memref<8x128xf32, #tpu.memory_space<vmem>>, vector<8x128xf32>,
    return
  }
}

</mosaic_0001>

<bundles_post_ra>
// kernel: lstm_model_forward.1
= control target key start
LH: loop header
LB: loop body
LE: loop exit
PB: predicated region body
PF: predicated region fallthrough
CT: control target
= control target key end

     0   :  { %13 = vsyncpa [#allocation4], 0  ;;  %s1528_s30 = smov [#allocation3]   ;;  %s1529_s10 = smov 128   ;;  %s1984_s0 = inlined_call_operand.vmem [shape: f32[8,8,128], index: 0, kind: input, shape index: {}]   ;;  %s1985_s1 = inlined_call_operand.vmem [shape: f32[128,128], index: 1, kind: input, shape index: {}]   ;;  %s1986_s2 = inlined_call_operand.vmem [shape: f32[32,128], index: 2, kind: input, shape index: {}]   ;;  %s1987_s3 = inlined_call_operand.vmem [shape: f32[1,32,128], index: 3, kind: input, shape index: {}]   ;;  %s1988_s4 = inlined_call_operand.vmem [shape: f32[1,32,128], index: 4, kind: input, shape index: {}]   ;;  %s1989_s5 = inlined_call_operand.vmem [shape: f32[2,1,128], index: 5, kind: input, shape index: {}]   ;;  %s1990_s6 = inlined_call_operand.hbm [shape: f32[32,128], index: 6, kind: input, shape index: {}]   ;;  %s1991_s7 = inlined_call_operand.vmem [shape: f32[1,128], index: 7, kind: input, shape index: {}]   ;;  %s1992_s8 = inlined_call_operand.vmem [shape: f32[8,128], index: 8, kind: output, shape index: {}]  }
   0x1   :  { %s30_s29 = sshll.u32 %s1990_s6, 4  ;;  %s32_s9 = sshll.u32 %s1528_s30, 4  ;;  %s31_s29 = int_to_ptr.hbm [resolvable:$true] %s30_s29  ;;  %s33_s9 = int_to_ptr.vmem [resolvable:$true] %s32_s9 }
   0x2   :  { %s1530_s11 = smov 8  }
   0x3   :  { %38 = dma.hbm_to_vmem [thread:$0]  %s31_s29, 512, %s33_s9, [#allocation4], %s1529_s10, %s1529_s10, %s1530_s11  }
   0x4   :  { %1526 = dma.done.wait [#allocation4], 512  }
   0x5   :  { %1527 = vsyncadd [#allocation4], 4294966784  ;;  %v68_v0 = vld [vmem:[%s1985_s1 + $0x78] sm:$0xff]  ;;  %v67_v1 = vld [vmem:[%s1985_s1 + $0x70] sm:$0xff]  ;;  %s1531_s24 = smov 64   ;;  %vm169_vm4 = vcmask 261120  }
   0x6   :  { %73 = vmatpush.msra.mxu0 %v68_v0  ;;  %v66_v2 = vld [vmem:[%s1985_s1 + $0x68] sm:$0xff]  ;;  %v65_v3 = vld [vmem:[%s1985_s1 + $0x60] sm:$0xff]  ;;  %v64_v4 = vld [vmem:[%s1985_s1 + $0x58] sm:$0xff] }
   0x7   :  { %v63_v5 = vld [vmem:[%s1985_s1 + $0x50] sm:$0xff]  ;;  %v62_v6 = vld [vmem:[%s1985_s1 + $0x48] sm:$0xff]  ;;  %v61_v7 = vld [vmem:[%s1985_s1 + $0x40] sm:$0xff] }
   0x8   :  { %74 = vmatpush.msra.mxu0 %v67_v1  ;;  %v60_v8 = vld [vmem:[%s1985_s1 + $0x38] sm:$0xff]  ;;  %v59_v9 = vld [vmem:[%s1985_s1 + $0x30] sm:$0xff]  ;;  %v58_v10 = vld [vmem:[%s1985_s1 + $0x28] sm:$0xff] }
   0x9   :  { %v57_v11 = vld [vmem:[%s1985_s1 + $0x20] sm:$0xff]  ;;  %v56_v12 = vld [vmem:[%s1985_s1 + $0x18] sm:$0xff]  ;;  %v55_v13 = vld [vmem:[%s1985_s1 + $0x10] sm:$0xff] }
   0xa   :  { %75 = vmatpush.msra.mxu0 %v66_v2  ;;  %v54_v14 = vld [vmem:[%s1985_s1 + $0x8] sm:$0xff]  ;;  %v53_v15 = vld [vmem:[%s1985_s1] sm:$0xff]  ;;  %s1532_s1 = smov 32   ;;  %v1647_v40 = vld [vmem:[%s1986_s2 + $0x18] sm:$0xff] }
   0xb   :  { %v45_v16 = vld [vmem:[%s1984_s0] sm:$0xff]  ;;  %v1652_v41 = vld [vmem:[%s1987_s3 + $0x18] sm:$0xff]  ;;  %v1657_v42 = vld [vmem:[%s1986_s2 + $0x10] sm:$0xff]  ;;  %184 = vmatpush.msra.mxu1 %v1647_v40  ;;  %316 = vmatpush.msra.mxu3 %v1647_v40 }
   0xc   :  { %76 = vmatpush.msra.mxu0 %v65_v3  ;;  %v1635_v17 = vld [vmem:[%s1989_s5] ss:$0 sm:$0xff]  ;;  %248 = vmatpush.msra.mxu2 %v1652_v41  ;;  %v1664_v43 = vld [vmem:[%s1987_s3 + $0x10] sm:$0xff]  ;;  %v1669_v44 = vld [vmem:[%s1986_s2 + $0x8] sm:$0xff] }
   0xd   :  { %v1674_v45 = vld [vmem:[%s1987_s3 + $0x8] sm:$0xff]  ;;  %185 = vmatpush.msra.mxu1 %v1657_v42  ;;  %v1685_v47 = vld [vmem:[%s1986_s2] sm:$0xff]  ;;  %317 = vmatpush.msra.mxu3 %v1657_v42 }
   0xe   :  { %77 = vmatpush.msra.mxu0 %v64_v4  ;;  %v46_v46 = vld [vmem:[%s1984_s0 + $0x8] sm:$0xff]  ;;  %249 = vmatpush.msra.mxu2 %v1664_v43  ;;  %v1690_v48 = vld [vmem:[%s1987_s3] sm:$0xff] }
   0xf   :  { %186 = vmatpush.msra.mxu1 %v1669_v44  ;;  %318 = vmatpush.msra.mxu3 %v1669_v44  ;;  %v1718_v56 = vld [vmem:[%s1989_s5 + $0x1] ss:$0 sm:$0xff] }
  0x10   :  { %78 = vmatpush.msra.mxu0 %v63_v5  ;;  %250 = vmatpush.msra.mxu2 %v1674_v45 }
  0x11   :  { %187 = vmatpush.msra.mxu1 %v1685_v47  ;;  %319 = vmatpush.msra.mxu3 %v1685_v47 }
  0x12   :  { %79 = vmatpush.msra.mxu0 %v62_v6  ;;  %251 = vmatpush.msra.mxu2 %v1690_v48 }
  0x13   :  { %374 = vmatpush.msrb.mxu1 %v1652_v41  ;;  %469 = vmatpush.msrb.mxu3 %v1647_v40 }
  0x14   :  { %80 = vmatpush.msra.mxu0 %v61_v7 }
  0x15   :  { %375 = vmatpush.msrb.mxu1 %v1664_v43  ;;  %470 = vmatpush.msrb.mxu3 %v1657_v42 }
  0x16   :  { %81 = vmatpush.msra.mxu0 %v60_v8 }
  0x17   :  { %376 = vmatpush.msrb.mxu1 %v1674_v45  ;;  %471 = vmatpush.msrb.mxu3 %v1669_v44 }
  0x18   :  { %82 = vmatpush.msra.mxu0 %v59_v9 }
  0x19   :  { %377 = vmatpush.msrb.mxu1 %v1690_v48  ;;  %472 = vmatpush.msrb.mxu3 %v1685_v47 }
  0x1a   :  { %83 = vmatpush.msra.mxu0 %v58_v10 }
  0x1c   :  { %84 = vmatpush.msra.mxu0 %v57_v11 }
  0x1e   :  { %85 = vmatpush.msra.mxu0 %v56_v12 }
  0x20   :  { %86 = vmatpush.msra.mxu0 %v55_v13 }
  0x22   :  { %87 = vmatpush.msra.mxu0 %v54_v14 }
  0x24   :  { %88 = vmatpush.msra.mxu0 %v53_v15 }
  0x25   :  { %89 = vmatmul.f32.vlgmr.msra.gmra.mxu0 %v45_v16 }
  0x2d   :  { %92 = vmatmul.f32.gmra.mxu0 %v46_v46  ;;  %v1739_v46 = vld [vmem:[%s1988_s4 + $0x18] sm:$0xff] }
  0x2e   :  { %404 = vmatpush.msrb.mxu2 %v1739_v46 }
  0xa2   :  { %v90_v18 = vpop.f32.mrf.mxu0 }
  0xa3   :  { %v91_v19 = vadd.f32 %v1635_v17, %v90_v18 }
  0xa5   :  { %1371 = vtanh.f32 %v91_v19  ;;  %v1323_v21 = vmul.f32 -1.442695, %v91_v19 }
  0xa7   :  { %1373 = vpow2.f32 %v1323_v21 }
  0xaa   :  { %v93_v52 = vpop.f32.mrf.mxu0 }
  0xab   :  { %v1372_v20 = vpop.eup %1371  ;;  %v94_v53 = vadd.f32 %v1635_v17, %v93_v52  ;;  %v1759_v52 = vld [vmem:[%s1988_s4] sm:$0xff] }
  0xac   :  { %145 = vrot.lane.b32.xlu0 %v1372_v20, %s1531_s24 }
  0xad   :  { %v1374_v22 = vpop.eup %1373 }
  0xae   :  { %v126_v23 = vadd.f32 1.0, %v1374_v22 }
  0xb0   :  { %1375 = vrcp.f32 %v126_v23  ;;  %v138_v29 = vand.u32 2147483648, %v126_v23  ;;  %vm132_vm1 = vweird.f32 %v126_v23  ;;  %v136_v30 = vand.u32 2147483647, %v126_v23 }
  0xb2   :  { %v139_v32 = vor.u32 1.1754944e-38, %v138_v29  ;;  %vm137_vm3 = vcmp.eq.f32.partialorder %v136_v30, 8.507059e+37 }
  0xb6   :  { %v1376_v24 = vpop.eup %1375 }
  0xb7   :  { %v128_v25 = vmul.f32 %v1376_v24, %v126_v23  ;;  %vm133_vm0 = vweird.f32 %v1376_v24 }
  0xb8   :  { %vm134_vm2 = vmor %vm132_vm1, %vm133_vm0 }
  0xb9   :  { %v129_v26 = vsub.f32 1.0, %v128_v25 }
  0xbb   :  { %v130_v27 = vmul.f32 %v1376_v24, %v129_v26 }
  0xbd   :  { %v131_v28 = vadd.f32 %v1376_v24, %v130_v27 }
  0xbf   :  { %v135_v31 = vsel %vm134_vm2, %v1376_v24, %v131_v28 }
  0xc0   :  { %v140_v34 = vsel %vm137_vm3, %v139_v32, %v135_v31 }
  0xc1   :  { %v143_v36 = vmul.f32 0.0, %v140_v34 }
 0x11e   :  { %v146_v33 = vpop.permute.xlu0 %145 }
 0x11f   :  { %v148_v35 = vmul.f32 %v146_v33, %v140_v34 }
 0x121   :  { %150 = vrot.lane.b32.xlu0 %v148_v35, %s1532_s1 }
 0x193   :  { %v151_v37 = vpop.permute.xlu0 %150 }
 0x194   :  { %v1640_v38 = vadd.f32 %v151_v37, %v143_v36 }
 0x196   :  { %1377 = vtanh.f32 %v1640_v38 }
 0x19c   :  { %v1378_v39 = vpop.eup %1377 }
 0x19d   :  { %156 = vrot.lane.b32.xlu1 %v1378_v39, %s1531_s24 }
 0x20f   :  { %v157_v49 = vpop.permute.xlu1 %156 }
 0x210   :  { %v159_v50 = vmul.f32 %v157_v49, %v140_v34  ;;  %v1744_v49 = vld [vmem:[%s1988_s4 + $0x10] sm:$0xff] }
 0x211   :  { %405 = vmatpush.msrb.mxu2 %v1744_v49 }
 0x212   :  { %167 = vrot.lane.b32.xlu1 %v159_v50, %s1532_s1  ;;  %v47_v50 = vld [vmem:[%s1984_s0 + $0x10] sm:$0xff] }
 0x213   :  { %95 = vmatmul.f32.gmra.mxu0 %v47_v50 }
 0x284   :  { %v168_v51 = vpop.permute.xlu1 %167 }
 0x285   :  { %1324 = vmatmul.msk.f32.vlgmr.msra.gmra.mxu1 %vm169_vm4, %v168_v51  ;;  %1327 = vmatmul.msk.f32.vlgmr.msra.gmra.mxu2 %vm169_vm4, %v168_v51  ;;  %v1753_v51 = vld [vmem:[%s1988_s4 + $0x8] sm:$0xff] }
 0x286   :  { %527 = vmatpush.msra.mxu1 %v1652_v41  ;;  %406 = vmatpush.msrb.mxu2 %v1753_v51 }
 0x288   :  { %528 = vmatpush.msra.mxu1 %v1664_v43  ;;  %407 = vmatpush.msrb.mxu2 %v1759_v52 }
 0x28a   :  { %529 = vmatpush.msra.mxu1 %v1674_v45  ;;  %553 = vmatpush.msra.mxu2 %v1739_v46 }
 0x28c   :  { %530 = vmatpush.msra.mxu1 %v1690_v48  ;;  %554 = vmatpush.msra.mxu2 %v1744_v49 }
 0x28e   :  { %555 = vmatpush.msra.mxu2 %v1753_v51 }
 0x290   :  { %556 = vmatpush.msra.mxu2 %v1759_v52 }
 0x302   :  { %v189_v54 = vpop.f32.mrf.mxu1 }
 0x303   :  { %v192_v55 = vadd.f32 %v189_v54, %v94_v53 }
 0x305   :  { %1379 = vtanh.f32 %v192_v55  ;;  %v1325_v61 = vmul.f32 -1.442695, %v192_v55  ;;  %v96_v55 = vpop.f32.mrf.mxu0 }
 0x308   :  { %v253_v57 = vpop.f32.mrf.mxu2 }
 0x309   :  { %v259_v58 = vadd.f32 %v1718_v56, %v253_v57  ;;  %v97_v57 = vadd.f32 %v1635_v17, %v96_v55 }
 0x30b   :  { %v1380_v59 = vpop.eup %1379  ;;  %1381 = vtanh.f32 %v259_v58  ;;  %v1328_v62 = vmul.f32 -1.442695, %v259_v58 }
 0x30c   :  { %215 = vrot.lane.b32.xlu2 %v1380_v59, %s1531_s24  ;;  %1383 = vpow2.f32 %v1325_v61 }
 0x30d   :  { %1385 = vpow2.f32 %v1328_v62 }
 0x311   :  { %v1382_v60 = vpop.eup %1381 }
 0x312   :  { %v1384_v63 = vpop.eup %1383 }
 0x313   :  { %v196_v0 = vadd.f32 1.0, %v1384_v63  ;;  %v1386_v1 = vpop.eup %1385 }
 0x314   :  { %282 = vrot.lane.b32.xlu2 %v1382_v60, %s1531_s24  ;;  %v263_v2 = vadd.f32 1.0, %v1386_v1 }
 0x315   :  { %1387 = vrcp.f32 %v196_v0  ;;  %v208_v11 = vand.u32 2147483648, %v196_v0  ;;  %vm202_vm6 = vweird.f32 %v196_v0  ;;  %v206_v12 = vand.u32 2147483647, %v196_v0 }
 0x316   :  { %1389 = vrcp.f32 %v263_v2  ;;  %v275_v21 = vand.u32 2147483648, %v263_v2  ;;  %vm269_vm10 = vweird.f32 %v263_v2  ;;  %v273_v22 = vand.u32 2147483647, %v263_v2 }
 0x317   :  { %v209_v15 = vor.u32 1.1754944e-38, %v208_v11  ;;  %vm207_vm8 = vcmp.eq.f32.partialorder %v206_v12, 8.507059e+37 }
 0x318   :  { %v276_v24 = vor.u32 1.1754944e-38, %v275_v21  ;;  %vm274_vm12 = vcmp.eq.f32.partialorder %v273_v22, 8.507059e+37 }
 0x31b   :  { %v1388_v3 = vpop.eup %1387 }
 0x31c   :  { %v198_v4 = vmul.f32 %v1388_v3, %v196_v0  ;;  %v1390_v6 = vpop.eup %1389  ;;  %vm203_vm5 = vweird.f32 %v1388_v3 }
 0x31d   :  { %v265_v8 = vmul.f32 %v1390_v6, %v263_v2  ;;  %vm204_vm7 = vmor %vm202_vm6, %vm203_vm5  ;;  %vm270_vm9 = vweird.f32 %v1390_v6 }
 0x31e   :  { %v199_v5 = vsub.f32 1.0, %v198_v4  ;;  %vm271_vm11 = vmor %vm269_vm10, %vm270_vm9 }
 0x31f   :  { %v266_v10 = vsub.f32 1.0, %v265_v8 }
 0x320   :  { %v200_v7 = vmul.f32 %v1388_v3, %v199_v5 }
 0x321   :  { %v267_v14 = vmul.f32 %v1390_v6, %v266_v10 }
 0x322   :  { %v201_v9 = vadd.f32 %v1388_v3, %v200_v7 }
 0x323   :  { %v268_v20 = vadd.f32 %v1390_v6, %v267_v14 }
 0x324   :  { %v205_v13 = vsel %vm204_vm7, %v1388_v3, %v201_v9 }
 0x325   :  { %v210_v18 = vsel %vm207_vm8, %v209_v15, %v205_v13  ;;  %v272_v23 = vsel %vm271_vm11, %v1390_v6, %v268_v20 }
 0x326   :  { %v277_v25 = vsel %vm274_vm12, %v276_v24, %v272_v23  ;;  %v213_v28 = vmul.f32 %v210_v18, %v1640_v38 }
 0x327   :  { %v280_v31 = vmul.f32 0.0, %v277_v25 }
 0x366   :  { %v216_v16 = vpop.permute.xlu2 %215 }
 0x367   :  { %v218_v19 = vmul.f32 %v216_v16, %v210_v18 }
 0x369   :  { %220 = vrot.lane.b32.xlu0 %v218_v19, %s1532_s1 }
 0x36e   :  { %v283_v26 = vpop.permute.xlu2 %282 }
 0x36f   :  { %v285_v27 = vmul.f32 %v283_v26, %v277_v25 }
 0x371   :  { %287 = vrot.lane.b32.xlu1 %v285_v27, %s1532_s1 }
 0x3db   :  { %v221_v29 = vpop.permute.xlu0 %220 }
 0x3dc   :  { %v1726_v30 = vadd.f32 %v221_v29, %v213_v28 }
 0x3de   :  { %1391 = vtanh.f32 %v1726_v30 }
 0x3e3   :  { %v288_v32 = vpop.permute.xlu1 %287 }
 0x3e4   :  { %v1392_v33 = vpop.eup %1391  ;;  %v1729_v34 = vadd.f32 %v288_v32, %v280_v31 }
 0x3e5   :  { %226 = vrot.lane.b32.xlu2 %v1392_v33, %s1531_s24 }
 0x3e6   :  { %1393 = vtanh.f32 %v1729_v34 }
 0x3ec   :  { %v1394_v35 = vpop.eup %1393 }
 0x3ed   :  { %293 = vrot.lane.b32.xlu0 %v1394_v35, %s1531_s24 }
 0x43f   :  { %v227_v36 = vpop.permute.xlu2 %226 }
 0x440   :  { %v229_v37 = vmul.f32 %v227_v36, %v210_v18 }
 0x442   :  { %300 = vrot.lane.b32.xlu1 %v229_v37, %s1532_s1 }
 0x45f   :  { %v294_v38 = vpop.permute.xlu0 %293 }
 0x460   :  { %v296_v39 = vmul.f32 %v294_v38, %v277_v25 }
 0x462   :  { %388 = vrot.lane.b32.xlu2 %v296_v39, %s1532_s1 }
 0x4b4   :  { %v301_v53 = vpop.permute.xlu1 %300 }
 0x4b5   :  { %1329 = vmatmul.msk.f32.vlgmr.msra.gmra.mxu3 %vm169_vm4, %v301_v53  ;;  %1331 = vmatmul.msk.f32.vlgmr.msrb.gmra.mxu1 %vm169_vm4, %v301_v53 }
 0x4b6   :  { %618 = vmatpush.msra.mxu3 %v1647_v40  ;;  %676 = vmatpush.msrb.mxu1 %v1652_v41 }
 0x4b8   :  { %619 = vmatpush.msra.mxu3 %v1657_v42  ;;  %677 = vmatpush.msrb.mxu1 %v1664_v43 }
 0x4ba   :  { %620 = vmatpush.msra.mxu3 %v1669_v44  ;;  %678 = vmatpush.msrb.mxu1 %v1674_v45 }
 0x4bc   :  { %v389_v54 = vpop.permute.xlu2 %388  ;;  %621 = vmatpush.msra.mxu3 %v1685_v47  ;;  %679 = vmatpush.msrb.mxu1 %v1690_v48 }
 0x4bd   :  { %1332 = vmatmul.msk.f32.vlgmr.msrb.gmra.mxu2 %vm169_vm4, %v389_v54 }
 0x4be   :  { %702 = vmatpush.msrb.mxu2 %v1739_v46 }
 0x4c0   :  { %703 = vmatpush.msrb.mxu2 %v1744_v49 }
 0x4c2   :  { %704 = vmatpush.msrb.mxu2 %v1753_v51 }
 0x4c4   :  { %705 = vmatpush.msrb.mxu2 %v1759_v52 }
 0x532   :  { %v379_v60 = vpop.f32.mrf.mxu1 }
 0x533   :  { %v382_v61 = vadd.f32 %v1718_v56, %v379_v60 }
 0x538   :  { %v321_v58 = vpop.f32.mrf.mxu3 }
 0x539   :  { %v324_v59 = vadd.f32 %v321_v58, %v97_v57 }
 0x53b   :  { %1395 = vtanh.f32 %v324_v59  ;;  %v1330_v2 = vmul.f32 -1.442695, %v324_v59 }
 0x540   :  { %v409_v62 = vpop.f32.mrf.mxu2 }
 0x541   :  { %v1396_v63 = vpop.eup %1395  ;;  %v412_v0 = vadd.f32 %v409_v62, %v382_v61 }
 0x542   :  { %347 = vrot.lane.b32.xlu0 %v1396_v63, %s1531_s24 }
 0x543   :  { %1397 = vtanh.f32 %v412_v0  ;;  %v1333_v3 = vmul.f32 -1.442695, %v412_v0 }
 0x544   :  { %1399 = vpow2.f32 %v1330_v2 }
 0x545   :  { %1401 = vpow2.f32 %v1333_v3 }
 0x549   :  { %v1398_v1 = vpop.eup %1397 }
 0x54a   :  { %435 = vrot.lane.b32.xlu1 %v1398_v1, %s1531_s24  ;;  %v1400_v4 = vpop.eup %1399 }
 0x54b   :  { %v328_v5 = vadd.f32 1.0, %v1400_v4  ;;  %v1402_v6 = vpop.eup %1401 }
 0x54c   :  { %v416_v7 = vadd.f32 1.0, %v1402_v6 }
 0x54d   :  { %1403 = vrcp.f32 %v328_v5  ;;  %v340_v16 = vand.u32 2147483648, %v328_v5  ;;  %vm334_vm14 = vweird.f32 %v328_v5  ;;  %v338_v18 = vand.u32 2147483647, %v328_v5 }
 0x54e   :  { %1405 = vrcp.f32 %v416_v7  ;;  %v428_v26 = vand.u32 2147483648, %v416_v7  ;;  %vm422_vm2 = vweird.f32 %v416_v7  ;;  %v426_v27 = vand.u32 2147483647, %v416_v7 }
 0x54f   :  { %v341_v21 = vor.u32 1.1754944e-38, %v340_v16  ;;  %vm339_vm0 = vcmp.eq.f32.partialorder %v338_v18, 8.507059e+37 }
 0x550   :  { %v429_v29 = vor.u32 1.1754944e-38, %v428_v26  ;;  %vm427_vm5 = vcmp.eq.f32.partialorder %v426_v27, 8.507059e+37 }
 0x553   :  { %v1404_v8 = vpop.eup %1403 }
 0x554   :  { %v330_v9 = vmul.f32 %v1404_v8, %v328_v5  ;;  %v1406_v11 = vpop.eup %1405  ;;  %vm335_vm13 = vweird.f32 %v1404_v8 }
 0x555   :  { %v418_v13 = vmul.f32 %v1406_v11, %v416_v7  ;;  %vm336_vm15 = vmor %vm334_vm14, %vm335_vm13  ;;  %vm423_vm1 = vweird.f32 %v1406_v11 }
 0x556   :  { %v331_v10 = vsub.f32 1.0, %v330_v9  ;;  %vm424_vm3 = vmor %vm422_vm2, %vm423_vm1 }
 0x557   :  { %v419_v15 = vsub.f32 1.0, %v418_v13 }
 0x558   :  { %v332_v12 = vmul.f32 %v1404_v8, %v331_v10 }
 0x559   :  { %v420_v20 = vmul.f32 %v1406_v11, %v419_v15 }
 0x55a   :  { %v333_v14 = vadd.f32 %v1404_v8, %v332_v12 }
 0x55b   :  { %v421_v25 = vadd.f32 %v1406_v11, %v420_v20 }
 0x55c   :  { %v337_v19 = vsel %vm336_vm15, %v1404_v8, %v333_v14 }
 0x55d   :  { %v342_v23 = vsel %vm339_vm0, %v341_v21, %v337_v19  ;;  %v425_v28 = vsel %vm424_vm3, %v1406_v11, %v421_v25 }
 0x55e   :  { %v430_v32 = vsel %vm427_vm5, %v429_v29, %v425_v28  ;;  %v345_v35 = vmul.f32 %v342_v23, %v1726_v30 }
 0x55f   :  { %v433_v39 = vmul.f32 %v430_v32, %v1729_v34  ;;  %v48_v34 = vld [vmem:[%s1984_s0 + $0x18] sm:$0xff] }
 0x560   :  { %98 = vmatmul.f32.gmra.mxu0 %v48_v34 }
 0x5b4   :  { %v348_v22 = vpop.permute.xlu0 %347 }
 0x5b5   :  { %v350_v24 = vmul.f32 %v348_v22, %v342_v23 }
 0x5b7   :  { %352 = vrot.lane.b32.xlu2 %v350_v24, %s1532_s1 }
 0x5bc   :  { %v436_v31 = vpop.permute.xlu1 %435 }
 0x5bd   :  { %v438_v33 = vmul.f32 %v436_v31, %v430_v32 }
 0x5bf   :  { %440 = vrot.lane.b32.xlu0 %v438_v33, %s1532_s1 }
 0x5dd   :  { %v99_v61 = vpop.f32.mrf.mxu0 }
 0x5de   :  { %v100_v62 = vadd.f32 %v1635_v17, %v99_v61 }
 0x611   :  { %v353_v36 = vpop.permute.xlu2 %352 }
 0x612   :  { %v1789_v37 = vadd.f32 %v353_v36, %v345_v35 }
 0x614   :  { %1407 = vtanh.f32 %v1789_v37 }
 0x61a   :  { %v1408_v38 = vpop.eup %1407 }
 0x61b   :  { %358 = vrot.lane.b32.xlu1 %v1408_v38, %s1531_s24 }
 0x631   :  { %v441_v50 = vpop.permute.xlu0 %440 }
 0x632   :  { %v1794_v53 = vadd.f32 %v441_v50, %v433_v39 }
 0x634   :  { %1409 = vtanh.f32 %v1794_v53 }
 0x63a   :  { %v1410_v54 = vpop.eup %1409 }
 0x63b   :  { %446 = vrot.lane.b32.xlu2 %v1410_v54, %s1531_s24 }
 0x68d   :  { %v359_v55 = vpop.permute.xlu1 %358 }
 0x68e   :  { %v361_v30 = vmul.f32 %v359_v55, %v342_v23 }
 0x690   :  { %453 = vrot.lane.b32.xlu0 %v361_v30, %s1532_s1 }
 0x695   :  { %v447_v57 = vpop.permute.xlu2 %446 }
 0x696   :  { %v449_v58 = vmul.f32 %v447_v57, %v430_v32 }
 0x698   :  { %537 = vrot.lane.b32.xlu1 %v449_v58, %s1532_s1 }
 0x702   :  { %v454_v59 = vpop.permute.xlu0 %453 }
 0x703   :  { %1334 = vmatmul.msk.f32.vlgmr.msrb.gmra.mxu3 %vm169_vm4, %v454_v59  ;;  %1336 = vmatmul.msk.f32.vlgmr.msra.gmra.mxu1 %vm169_vm4, %v454_v59 }
 0x704   :  { %767 = vmatpush.msrb.mxu3 %v1647_v40  ;;  %825 = vmatpush.msra.mxu1 %v1652_v41 }
 0x706   :  { %768 = vmatpush.msrb.mxu3 %v1657_v42  ;;  %826 = vmatpush.msra.mxu1 %v1664_v43 }
 0x708   :  { %769 = vmatpush.msrb.mxu3 %v1669_v44  ;;  %827 = vmatpush.msra.mxu1 %v1674_v45 }
 0x70a   :  { %v538_v60 = vpop.permute.xlu1 %537  ;;  %770 = vmatpush.msrb.mxu3 %v1685_v47  ;;  %828 = vmatpush.msra.mxu1 %v1690_v48 }
 0x70b   :  { %1337 = vmatmul.msk.f32.vlgmr.msra.gmra.mxu2 %vm169_vm4, %v538_v60 }
 0x70c   :  { %851 = vmatpush.msra.mxu2 %v1739_v46 }
 0x70e   :  { %852 = vmatpush.msra.mxu2 %v1744_v49 }
 0x710   :  { %853 = vmatpush.msra.mxu2 %v1753_v51 }
 0x712   :  { %854 = vmatpush.msra.mxu2 %v1759_v52 }
 0x780   :  { %v532_v1 = vpop.f32.mrf.mxu1 }
 0x781   :  { %v535_v2 = vadd.f32 %v1718_v56, %v532_v1 }
 0x786   :  { %v474_v63 = vpop.f32.mrf.mxu3 }
 0x787   :  { %v477_v0 = vadd.f32 %v474_v63, %v100_v62 }
 0x789   :  { %1411 = vtanh.f32 %v477_v0  ;;  %v1335_v7 = vmul.f32 -1.442695, %v477_v0 }
 0x78e   :  { %v558_v3 = vpop.f32.mrf.mxu2 }
 0x78f   :  { %v1412_v4 = vpop.eup %1411  ;;  %v561_v5 = vadd.f32 %v558_v3, %v535_v2 }
 0x790   :  { %500 = vrot.lane.b32.xlu2 %v1412_v4, %s1531_s24 }
 0x791   :  { %1413 = vtanh.f32 %v561_v5  ;;  %v1338_v13 = vmul.f32 -1.442695, %v561_v5 }
 0x792   :  { %1415 = vpow2.f32 %v1335_v7 }
 0x797   :  { %v1414_v6 = vpop.eup %1413 }
 0x798   :  { %584 = vrot.lane.b32.xlu0 %v1414_v6, %s1531_s24  ;;  %v1416_v8 = vpop.eup %1415 }
 0x799   :  { %v481_v9 = vadd.f32 1.0, %v1416_v8 }
 0x79b   :  { %1417 = vrcp.f32 %v481_v9  ;;  %v493_v16 = vand.u32 2147483648, %v481_v9  ;;  %vm487_vm7 = vweird.f32 %v481_v9  ;;  %v491_v18 = vand.u32 2147483647, %v481_v9 }
 0x79c   :  { %1419 = vpow2.f32 %v1338_v13 }
 0x79d   :  { %v494_v21 = vor.u32 1.1754944e-38, %v493_v16  ;;  %vm492_vm9 = vcmp.eq.f32.partialorder %v491_v18, 8.507059e+37 }
 0x7a1   :  { %v1418_v10 = vpop.eup %1417 }
 0x7a2   :  { %v483_v11 = vmul.f32 %v1418_v10, %v481_v9  ;;  %vm488_vm6 = vweird.f32 %v1418_v10  ;;  %v1420_v19 = vpop.eup %1419 }
 0x7a3   :  { %vm489_vm8 = vmor %vm487_vm7, %vm488_vm6  ;;  %v565_v22 = vadd.f32 1.0, %v1420_v19 }
 0x7a4   :  { %v484_v12 = vsub.f32 1.0, %v483_v11 }
 0x7a5   :  { %1421 = vrcp.f32 %v565_v22  ;;  %v577_v32 = vand.u32 2147483648, %v565_v22  ;;  %vm571_vm11 = vweird.f32 %v565_v22  ;;  %v575_v33 = vand.u32 2147483647, %v565_v22 }
 0x7a6   :  { %v485_v14 = vmul.f32 %v1418_v10, %v484_v12 }
 0x7a7   :  { %v578_v36 = vor.u32 1.1754944e-38, %v577_v32  ;;  %vm576_vm13 = vcmp.eq.f32.partialorder %v575_v33, 8.507059e+37 }
 0x7a8   :  { %v486_v15 = vadd.f32 %v1418_v10, %v485_v14 }
 0x7aa   :  { %v490_v20 = vsel %vm489_vm8, %v1418_v10, %v486_v15 }
 0x7ab   :  { %v495_v23 = vsel %vm492_vm9, %v494_v21, %v490_v20  ;;  %v1422_v26 = vpop.eup %1421 }
 0x7ac   :  { %v567_v27 = vmul.f32 %v1422_v26, %v565_v22  ;;  %vm572_vm10 = vweird.f32 %v1422_v26  ;;  %v498_v54 = vmul.f32 %v495_v23, %v1789_v37 }
 0x7ad   :  { %vm573_vm12 = vmor %vm571_vm11, %vm572_vm10 }
 0x7ae   :  { %v568_v28 = vsub.f32 1.0, %v567_v27 }
 0x7b0   :  { %v569_v29 = vmul.f32 %v1422_v26, %v568_v28 }
 0x7b2   :  { %v570_v31 = vadd.f32 %v1422_v26, %v569_v29 }
 0x7b4   :  { %v574_v35 = vsel %vm573_vm12, %v1422_v26, %v570_v31 }
 0x7b5   :  { %v579_v39 = vsel %vm576_vm13, %v578_v36, %v574_v35 }
 0x7b6   :  { %v582_v57 = vmul.f32 %v579_v39, %v1794_v53  ;;  %v49_v53 = vld [vmem:[%s1984_s0 + $0x20] sm:$0xff] }
 0x7b7   :  { %101 = vmatmul.f32.gmra.mxu0 %v49_v53 }
 0x7ea   :  { %v501_v24 = vpop.permute.xlu2 %500 }
 0x7eb   :  { %v503_v25 = vmul.f32 %v501_v24, %v495_v23 }
 0x7ed   :  { %505 = vrot.lane.b32.xlu1 %v503_v25, %s1532_s1 }
 0x80a   :  { %v585_v38 = vpop.permute.xlu0 %584 }
 0x80b   :  { %v587_v50 = vmul.f32 %v585_v38, %v579_v39 }
 0x80d   :  { %589 = vrot.lane.b32.xlu2 %v587_v50, %s1532_s1 }
 0x834   :  { %v102_v2 = vpop.f32.mrf.mxu0 }
 0x835   :  { %v103_v3 = vadd.f32 %v1635_v17, %v102_v2 }
 0x85f   :  { %v506_v55 = vpop.permute.xlu1 %505 }
 0x860   :  { %v1825_v30 = vadd.f32 %v506_v55, %v498_v54 }
 0x862   :  { %1423 = vtanh.f32 %v1825_v30 }
 0x867   :  { %v590_v58 = vpop.permute.xlu2 %589 }
 0x868   :  { %v1424_v34 = vpop.eup %1423  ;;  %v1829_v59 = vadd.f32 %v590_v58, %v582_v57 }
 0x869   :  { %511 = vrot.lane.b32.xlu0 %v1424_v34, %s1531_s24 }
 0x86a   :  { %1425 = vtanh.f32 %v1829_v59 }
 0x870   :  { %v1426_v60 = vpop.eup %1425 }
 0x871   :  { %595 = vrot.lane.b32.xlu1 %v1426_v60, %s1531_s24 }
 0x8db   :  { %v512_v61 = vpop.permute.xlu0 %511 }
 0x8dc   :  { %v514_v37 = vmul.f32 %v512_v61, %v495_v23 }
 0x8de   :  { %602 = vrot.lane.b32.xlu2 %v514_v37, %s1532_s1 }
 0x8e3   :  { %v596_v62 = vpop.permute.xlu1 %595 }
 0x8e4   :  { %v598_v63 = vmul.f32 %v596_v62, %v579_v39 }
 0x8e6   :  { %686 = vrot.lane.b32.xlu0 %v598_v63, %s1532_s1 }
 0x938   :  { %v603_v0 = vpop.permute.xlu2 %602 }
 0x939   :  { %1339 = vmatmul.msk.f32.vlgmr.msra.gmra.mxu3 %vm169_vm4, %v603_v0  ;;  %1341 = vmatmul.msk.f32.vlgmr.msrb.gmra.mxu1 %vm169_vm4, %v603_v0 }
 0x93a   :  { %916 = vmatpush.msra.mxu3 %v1647_v40  ;;  %974 = vmatpush.msrb.mxu1 %v1652_v41 }
 0x93c   :  { %917 = vmatpush.msra.mxu3 %v1657_v42  ;;  %975 = vmatpush.msrb.mxu1 %v1664_v43 }
 0x93e   :  { %918 = vmatpush.msra.mxu3 %v1669_v44  ;;  %976 = vmatpush.msrb.mxu1 %v1674_v45 }
 0x940   :  { %919 = vmatpush.msra.mxu3 %v1685_v47  ;;  %977 = vmatpush.msrb.mxu1 %v1690_v48 }
 0x958   :  { %v687_v1 = vpop.permute.xlu0 %686 }
 0x959   :  { %1342 = vmatmul.msk.f32.vlgmr.msrb.gmra.mxu2 %vm169_vm4, %v687_v1 }
 0x95a   :  { %1000 = vmatpush.msrb.mxu2 %v1739_v46 }
 0x95c   :  { %1001 = vmatpush.msrb.mxu2 %v1744_v49 }
 0x95e   :  { %1002 = vmatpush.msrb.mxu2 %v1753_v51 }
 0x960   :  { %1003 = vmatpush.msrb.mxu2 %v1759_v52 }
 0x9b6   :  { %v681_v7 = vpop.f32.mrf.mxu1 }
 0x9b7   :  { %v684_v8 = vadd.f32 %v1718_v56, %v681_v7 }
 0x9bc   :  { %v623_v4 = vpop.f32.mrf.mxu3 }
 0x9bd   :  { %v626_v5 = vadd.f32 %v623_v4, %v103_v3 }
 0x9bf   :  { %1427 = vtanh.f32 %v626_v5  ;;  %v1340_v12 = vmul.f32 -1.442695, %v626_v5 }
 0x9c5   :  { %v1428_v6 = vpop.eup %1427 }
 0x9c6   :  { %649 = vrot.lane.b32.xlu1 %v1428_v6, %s1531_s24 }
 0x9dc   :  { %v707_v9 = vpop.f32.mrf.mxu2 }
 0x9dd   :  { %v710_v10 = vadd.f32 %v707_v9, %v684_v8 }
 0x9df   :  { %1429 = vtanh.f32 %v710_v10  ;;  %v1343_v13 = vmul.f32 -1.442695, %v710_v10 }
 0x9e0   :  { %1431 = vpow2.f32 %v1340_v12 }
 0x9e1   :  { %1433 = vpow2.f32 %v1343_v13 }
 0x9e5   :  { %v1430_v11 = vpop.eup %1429 }
 0x9e6   :  { %733 = vrot.lane.b32.xlu2 %v1430_v11, %s1531_s24  ;;  %v1432_v14 = vpop.eup %1431 }
 0x9e7   :  { %v630_v15 = vadd.f32 1.0, %v1432_v14  ;;  %v1434_v16 = vpop.eup %1433 }
 0x9e8   :  { %v714_v18 = vadd.f32 1.0, %v1434_v16 }
 0x9e9   :  { %1435 = vrcp.f32 %v630_v15  ;;  %v642_v27 = vand.u32 2147483648, %v630_v15  ;;  %vm636_vm15 = vweird.f32 %v630_v15  ;;  %v640_v28 = vand.u32 2147483647, %v630_v15 }
 0x9ea   :  { %1437 = vrcp.f32 %v714_v18  ;;  %v726_v39 = vand.u32 2147483648, %v714_v18  ;;  %vm720_vm3 = vweird.f32 %v714_v18  ;;  %v724_v50 = vand.u32 2147483647, %v714_v18 }
 0x9eb   :  { %v643_v32 = vor.u32 1.1754944e-38, %v642_v27  ;;  %vm641_vm1 = vcmp.eq.f32.partialorder %v640_v28, 8.507059e+37 }
 0x9ec   :  { %v727_v55 = vor.u32 1.1754944e-38, %v726_v39  ;;  %vm725_vm6 = vcmp.eq.f32.partialorder %v724_v50, 8.507059e+37 }
 0x9ef   :  { %v1436_v19 = vpop.eup %1435 }
 0x9f0   :  { %v632_v20 = vmul.f32 %v1436_v19, %v630_v15  ;;  %v1438_v22 = vpop.eup %1437  ;;  %vm637_vm14 = vweird.f32 %v1436_v19 }
 0x9f1   :  { %v716_v24 = vmul.f32 %v1438_v22, %v714_v18  ;;  %vm638_vm0 = vmor %vm636_vm15, %vm637_vm14  ;;  %vm721_vm2 = vweird.f32 %v1438_v22 }
 0x9f2   :  { %v633_v21 = vsub.f32 1.0, %v632_v20  ;;  %vm722_vm5 = vmor %vm720_vm3, %vm721_vm2 }
 0x9f3   :  { %v717_v26 = vsub.f32 1.0, %v716_v24 }
 0x9f4   :  { %v634_v23 = vmul.f32 %v1436_v19, %v633_v21 }
 0x9f5   :  { %v718_v31 = vmul.f32 %v1438_v22, %v717_v26 }
 0x9f6   :  { %v635_v25 = vadd.f32 %v1436_v19, %v634_v23 }
 0x9f7   :  { %v719_v38 = vadd.f32 %v1438_v22, %v718_v31 }
 0x9f8   :  { %v639_v29 = vsel %vm638_vm0, %v1436_v19, %v635_v25 }
 0x9f9   :  { %v644_v35 = vsel %vm641_vm1, %v643_v32, %v639_v29  ;;  %v723_v54 = vsel %vm722_vm5, %v1438_v22, %v719_v38 }
 0x9fa   :  { %v728_v58 = vsel %vm725_vm6, %v727_v55, %v723_v54  ;;  %v647_v60 = vmul.f32 %v644_v35, %v1825_v30 }
 0x9fb   :  { %v731_v62 = vmul.f32 %v728_v58, %v1829_v59  ;;  %v50_v59 = vld [vmem:[%s1984_s0 + $0x28] sm:$0xff] }
 0x9fc   :  { %104 = vmatmul.f32.gmra.mxu0 %v50_v59 }
 0xa38   :  { %v650_v33 = vpop.permute.xlu1 %649 }
 0xa39   :  { %v652_v36 = vmul.f32 %v650_v33, %v644_v35 }
 0xa3b   :  { %654 = vrot.lane.b32.xlu0 %v652_v36, %s1532_s1 }
 0xa40   :  { %v734_v57 = vpop.permute.xlu2 %733 }
 0xa41   :  { %v736_v34 = vmul.f32 %v734_v57, %v728_v58 }
 0xa43   :  { %738 = vrot.lane.b32.xlu1 %v736_v34, %s1532_s1 }
 0xaad   :  { %v655_v61 = vpop.permute.xlu0 %654 }
 0xaae   :  { %v1861_v37 = vadd.f32 %v655_v61, %v647_v60 }
 0xab0   :  { %1439 = vtanh.f32 %v1861_v37 }
 0xab5   :  { %v739_v63 = vpop.permute.xlu1 %738 }
 0xab6   :  { %v1440_v53 = vpop.eup %1439  ;;  %v1865_v0 = vadd.f32 %v739_v63, %v731_v62 }
 0xab7   :  { %660 = vrot.lane.b32.xlu2 %v1440_v53, %s1531_s24 }
 0xab8   :  { %1441 = vtanh.f32 %v1865_v0 }
 0xabe   :  { %v1442_v1 = vpop.eup %1441 }
 0xabf   :  { %744 = vrot.lane.b32.xlu0 %v1442_v1, %s1531_s24 }
 0xb11   :  { %v661_v2 = vpop.permute.xlu2 %660 }
 0xb12   :  { %v663_v30 = vmul.f32 %v661_v2, %v644_v35 }
 0xb14   :  { %751 = vrot.lane.b32.xlu1 %v663_v30, %s1532_s1 }
 0xb31   :  { %v745_v3 = vpop.permute.xlu0 %744 }
 0xb32   :  { %v747_v4 = vmul.f32 %v745_v3, %v728_v58 }
 0xb34   :  { %835 = vrot.lane.b32.xlu2 %v747_v4, %s1532_s1 }
 0xb86   :  { %v752_v5 = vpop.permute.xlu1 %751 }
 0xb87   :  { %1344 = vmatmul.msk.f32.vlgmr.msrb.gmra.mxu3 %vm169_vm4, %v752_v5  ;;  %1346 = vmatmul.msk.f32.vlgmr.msra.gmra.mxu1 %vm169_vm4, %v752_v5  ;;  %v1499_v5 = vld [vmem:[%s1987_s3 + $0x18] sm:$0xff] }
 0xb88   :  { %1065 = vmatpush.msrb.mxu3 %v1647_v40  ;;  %1123 = vmatpush.msra.mxu1 %v1652_v41  ;;  %v105_v40 = vpop.f32.mrf.mxu0 }
 0xb89   :  { %v106_v41 = vadd.f32 %v1635_v17, %v105_v40 }
 0xb8a   :  { %1066 = vmatpush.msrb.mxu3 %v1657_v42  ;;  %1124 = vmatpush.msra.mxu1 %v1664_v43 }
 0xb8c   :  { %1067 = vmatpush.msrb.mxu3 %v1669_v44  ;;  %1125 = vmatpush.msra.mxu1 %v1674_v45 }
 0xb8e   :  { %v836_v6 = vpop.permute.xlu2 %835  ;;  %1068 = vmatpush.msrb.mxu3 %v1685_v47  ;;  %1126 = vmatpush.msra.mxu1 %v1690_v48 }
 0xb8f   :  { %1347 = vmatmul.msk.f32.vlgmr.msra.gmra.mxu2 %vm169_vm4, %v836_v6 }
 0xb90   :  { %1149 = vmatpush.msra.mxu2 %v1739_v46 }
 0xb92   :  { %1150 = vmatpush.msra.mxu2 %v1744_v49 }
 0xb94   :  { %1151 = vmatpush.msra.mxu2 %v1753_v51 }
 0xb96   :  { %1152 = vmatpush.msra.mxu2 %v1759_v52 }
 0xc04   :  { %v830_v7 = vpop.f32.mrf.mxu1 }
 0xc05   :  { %v833_v47 = vadd.f32 %v1718_v56, %v830_v7 }
 0xc0a   :  { %v772_v42 = vpop.f32.mrf.mxu3 }
 0xc0b   :  { %v775_v44 = vadd.f32 %v772_v42, %v106_v41 }
 0xc0d   :  { %1443 = vtanh.f32 %v775_v44  ;;  %v1345_v12 = vmul.f32 -1.442695, %v775_v44 }
 0xc12   :  { %v856_v8 = vpop.f32.mrf.mxu2 }
 0xc13   :  { %v1444_v9 = vpop.eup %1443  ;;  %v859_v10 = vadd.f32 %v856_v8, %v833_v47 }
 0xc14   :  { %798 = vrot.lane.b32.xlu0 %v1444_v9, %s1531_s24 }
 0xc15   :  { %1445 = vtanh.f32 %v859_v10  ;;  %v1348_v13 = vmul.f32 -1.442695, %v859_v10 }
 0xc16   :  { %1447 = vpow2.f32 %v1345_v12 }
 0xc17   :  { %1449 = vpow2.f32 %v1348_v13 }
 0xc1b   :  { %v1446_v11 = vpop.eup %1445 }
 0xc1c   :  { %882 = vrot.lane.b32.xlu1 %v1446_v11, %s1531_s24  ;;  %v1448_v14 = vpop.eup %1447 }
 0xc1d   :  { %v779_v17 = vadd.f32 1.0, %v1448_v14  ;;  %v1450_v15 = vpop.eup %1449 }
 0xc1e   :  { %v863_v16 = vadd.f32 1.0, %v1450_v15 }
 0xc1f   :  { %1451 = vrcp.f32 %v779_v17  ;;  %v791_v26 = vand.u32 2147483648, %v779_v17  ;;  %vm785_vm8 = vweird.f32 %v779_v17  ;;  %v789_v27 = vand.u32 2147483647, %v779_v17 }
 0xc20   :  { %1453 = vrcp.f32 %v863_v16  ;;  %v875_v38 = vand.u32 2147483648, %v863_v16  ;;  %vm869_vm12 = vweird.f32 %v863_v16  ;;  %v873_v39 = vand.u32 2147483647, %v863_v16 }
 0xc21   :  { %v792_v31 = vor.u32 1.1754944e-38, %v791_v26  ;;  %vm790_vm10 = vcmp.eq.f32.partialorder %v789_v27, 8.507059e+37 }
 0xc22   :  { %v876_v54 = vor.u32 1.1754944e-38, %v875_v38  ;;  %vm874_vm14 = vcmp.eq.f32.partialorder %v873_v39, 8.507059e+37 }
 0xc25   :  { %v1452_v18 = vpop.eup %1451 }
 0xc26   :  { %v781_v19 = vmul.f32 %v1452_v18, %v779_v17  ;;  %v1454_v21 = vpop.eup %1453  ;;  %vm786_vm7 = vweird.f32 %v1452_v18 }
 0xc27   :  { %v865_v23 = vmul.f32 %v1454_v21, %v863_v16  ;;  %vm787_vm9 = vmor %vm785_vm8, %vm786_vm7  ;;  %vm870_vm11 = vweird.f32 %v1454_v21 }
 0xc28   :  { %v782_v20 = vsub.f32 1.0, %v781_v19  ;;  %vm871_vm13 = vmor %vm869_vm12, %vm870_vm11 }
 0xc29   :  { %v866_v25 = vsub.f32 1.0, %v865_v23 }
 0xc2a   :  { %v783_v22 = vmul.f32 %v1452_v18, %v782_v20 }
 0xc2b   :  { %v867_v29 = vmul.f32 %v1454_v21, %v866_v25 }
 0xc2c   :  { %v784_v24 = vadd.f32 %v1452_v18, %v783_v22 }
 0xc2d   :  { %v868_v36 = vadd.f32 %v1454_v21, %v867_v29 }
 0xc2e   :  { %v788_v28 = vsel %vm787_vm9, %v1452_v18, %v784_v24 }
 0xc2f   :  { %v793_v33 = vsel %vm790_vm10, %v792_v31, %v788_v28  ;;  %v872_v50 = vsel %vm871_vm13, %v1454_v21, %v868_v36 }
 0xc30   :  { %v877_v57 = vsel %vm874_vm14, %v876_v54, %v872_v50  ;;  %v796_v34 = vmul.f32 %v793_v33, %v1861_v37 }
 0xc31   :  { %v880_v63 = vmul.f32 %v877_v57, %v1865_v0  ;;  %v51_v0 = vld [vmem:[%s1984_s0 + $0x30] sm:$0xff] }
 0xc32   :  { %107 = vmatmul.f32.gmra.mxu0 %v51_v0 }
 0xc86   :  { %v799_v32 = vpop.permute.xlu0 %798 }
 0xc87   :  { %v801_v35 = vmul.f32 %v799_v32, %v793_v33 }
 0xc89   :  { %803 = vrot.lane.b32.xlu2 %v801_v35, %s1532_s1 }
 0xc8e   :  { %v883_v55 = vpop.permute.xlu1 %882 }
 0xc8f   :  { %v885_v58 = vmul.f32 %v883_v55, %v877_v57 }
 0xc91   :  { %887 = vrot.lane.b32.xlu0 %v885_v58, %s1532_s1 }
 0xcaf   :  { %v108_v40 = vpop.f32.mrf.mxu0 }
 0xce3   :  { %v804_v60 = vpop.permute.xlu2 %803 }
 0xce4   :  { %v1897_v61 = vadd.f32 %v804_v60, %v796_v34 }
 0xce6   :  { %1455 = vtanh.f32 %v1897_v61 }
 0xcec   :  { %v1456_v62 = vpop.eup %1455 }
 0xced   :  { %809 = vrot.lane.b32.xlu1 %v1456_v62, %s1531_s24 }
 0xd03   :  { %v888_v53 = vpop.permute.xlu0 %887 }
 0xd04   :  { %v1902_v1 = vadd.f32 %v888_v53, %v880_v63  ;;  %v52_v53 = vld [vmem:[%s1984_s0 + $0x38] sm:$0xff] }
 0xd05   :  { %110 = vmatmul.f32.gmra.mxu0 %v52_v53 }
 0xd06   :  { %1457 = vtanh.f32 %v1902_v1 }
 0xd0c   :  { %v1458_v2 = vpop.eup %1457 }
 0xd0d   :  { %893 = vrot.lane.b32.xlu2 %v1458_v2, %s1531_s24 }
 0xd5f   :  { %v810_v30 = vpop.permute.xlu1 %809 }
 0xd60   :  { %v812_v37 = vmul.f32 %v810_v30, %v793_v33 }
 0xd62   :  { %900 = vrot.lane.b32.xlu0 %v812_v37, %s1532_s1 }
 0xd67   :  { %v894_v3 = vpop.permute.xlu2 %893 }
 0xd68   :  { %v896_v4 = vmul.f32 %v894_v3, %v877_v57 }
 0xd6a   :  { %984 = vrot.lane.b32.xlu1 %v896_v4, %s1532_s1 }
 0xd82   :  { %v111_v30 = vpop.f32.mrf.mxu0 }
 0xdd4   :  { %v901_v59 = vpop.permute.xlu0 %900 }
 0xdd5   :  { %1349 = vmatmul.msk.f32.vlgmr.msra.gmra.mxu3 %vm169_vm4, %v901_v59  ;;  %1351 = vmatmul.msk.f32.vlgmr.msrb.gmra.mxu1 %vm169_vm4, %v901_v59 }
 0xdd6   :  { %1212 = vmatpush.msra.mxu3 %v1499_v5  ;;  %1238 = vmatpush.msrb.mxu1 %v1739_v46  ;;  %v1927_v46 = vld [vmem:[%s1989_s5] ss:$0 sm:$0xff]  ;;  %v1958_v5 = vld [vmem:[%s1989_s5 + $0x1] ss:$0 sm:$0xff] }
 0xdd7   :  { %v112_v37 = vadd.f32 %v1927_v46, %v111_v30 }
 0xdd8   :  { %1213 = vmatpush.msra.mxu3 %v1664_v43  ;;  %1239 = vmatpush.msrb.mxu1 %v1744_v49  ;;  %v109_v43 = vadd.f32 %v1927_v46, %v108_v40 }
 0xdda   :  { %1214 = vmatpush.msra.mxu3 %v1674_v45  ;;  %1240 = vmatpush.msrb.mxu1 %v1753_v51 }
 0xddc   :  { %v985_v6 = vpop.permute.xlu1 %984  ;;  %1215 = vmatpush.msra.mxu3 %v1690_v48  ;;  %1241 = vmatpush.msrb.mxu1 %v1759_v52 }
 0xddd   :  { %1352 = vmatmul.msk.f32.vlgmr.msrb.gmra.mxu2 %vm169_vm4, %v985_v6 }
 0xe52   :  { %v979_v45 = vpop.f32.mrf.mxu1 }
 0xe53   :  { %v982_v51 = vadd.f32 %v1718_v56, %v979_v45 }
 0xe58   :  { %v921_v49 = vpop.f32.mrf.mxu3 }
 0xe59   :  { %v924_v41 = vadd.f32 %v921_v49, %v109_v43 }
 0xe5b   :  { %1459 = vtanh.f32 %v924_v41  ;;  %v1350_v7 = vmul.f32 -1.442695, %v924_v41 }
 0xe60   :  { %v1005_v42 = vpop.f32.mrf.mxu2 }
 0xe61   :  { %v1460_v48 = vpop.eup %1459  ;;  %v1008_v44 = vadd.f32 %v1005_v42, %v982_v51 }
 0xe62   :  { %947 = vrot.lane.b32.xlu2 %v1460_v48, %s1531_s24 }
 0xe63   :  { %1461 = vtanh.f32 %v1008_v44  ;;  %v1353_v12 = vmul.f32 -1.442695, %v1008_v44 }
 0xe64   :  { %1463 = vpow2.f32 %v1350_v7 }
 0xe69   :  { %v1462_v52 = vpop.eup %1461 }
 0xe6a   :  { %1031 = vrot.lane.b32.xlu0 %v1462_v52, %s1531_s24  ;;  %v1464_v47 = vpop.eup %1463 }
 0xe6b   :  { %v928_v8 = vadd.f32 1.0, %v1464_v47 }
 0xe6d   :  { %1465 = vrcp.f32 %v928_v8  ;;  %v940_v14 = vand.u32 2147483648, %v928_v8  ;;  %vm934_vm0 = vweird.f32 %v928_v8  ;;  %v938_v17 = vand.u32 2147483647, %v928_v8 }
 0xe6e   :  { %1467 = vpow2.f32 %v1353_v12 }
 0xe6f   :  { %v941_v18 = vor.u32 1.1754944e-38, %v940_v14  ;;  %vm939_vm2 = vcmp.eq.f32.partialorder %v938_v17, 8.507059e+37 }
 0xe73   :  { %v1466_v9 = vpop.eup %1465 }
 0xe74   :  { %v930_v10 = vmul.f32 %v1466_v9, %v928_v8  ;;  %vm935_vm15 = vweird.f32 %v1466_v9  ;;  %v1468_v15 = vpop.eup %1467 }
 0xe75   :  { %vm936_vm1 = vmor %vm934_vm0, %vm935_vm15  ;;  %v1012_v19 = vadd.f32 1.0, %v1468_v15 }
 0xe76   :  { %v931_v11 = vsub.f32 1.0, %v930_v10 }
 0xe77   :  { %1469 = vrcp.f32 %v1012_v19  ;;  %v1024_v28 = vand.u32 2147483648, %v1012_v19  ;;  %vm1018_vm5 = vweird.f32 %v1012_v19  ;;  %v1022_v29 = vand.u32 2147483647, %v1012_v19 }
 0xe78   :  { %v932_v13 = vmul.f32 %v1466_v9, %v931_v11 }
 0xe79   :  { %v1025_v32 = vor.u32 1.1754944e-38, %v1024_v28  ;;  %vm1023_vm7 = vcmp.eq.f32.partialorder %v1022_v29, 8.507059e+37 }
 0xe7a   :  { %v933_v56 = vadd.f32 %v1466_v9, %v932_v13 }
 0xe7c   :  { %v937_v16 = vsel %vm936_vm1, %v1466_v9, %v933_v56 }
 0xe7d   :  { %v942_v20 = vsel %vm939_vm2, %v941_v18, %v937_v16  ;;  %v1470_v23 = vpop.eup %1469 }
 0xe7e   :  { %v1014_v24 = vmul.f32 %v1470_v23, %v1012_v19  ;;  %vm1019_vm3 = vweird.f32 %v1470_v23  ;;  %v945_v38 = vmul.f32 %v942_v20, %v1897_v61 }
 0xe7f   :  { %vm1020_vm6 = vmor %vm1018_vm5, %vm1019_vm3 }
 0xe80   :  { %v1015_v25 = vsub.f32 1.0, %v1014_v24 }
 0xe82   :  { %v1016_v26 = vmul.f32 %v1470_v23, %v1015_v25 }
 0xe84   :  { %v1017_v27 = vadd.f32 %v1470_v23, %v1016_v26 }
 0xe86   :  { %v1021_v31 = vsel %vm1020_vm6, %v1470_v23, %v1017_v27 }
 0xe87   :  { %v1026_v35 = vsel %vm1023_vm7, %v1025_v32, %v1021_v31 }
 0xe88   :  { %v1029_v54 = vmul.f32 %v1026_v35, %v1902_v1 }
 0xebc   :  { %v948_v21 = vpop.permute.xlu2 %947 }
 0xebd   :  { %v950_v22 = vmul.f32 %v948_v21, %v942_v20 }
 0xebf   :  { %952 = vrot.lane.b32.xlu1 %v950_v22, %s1532_s1 }
 0xedc   :  { %v1032_v33 = vpop.permute.xlu0 %1031 }
 0xedd   :  { %v1034_v36 = vmul.f32 %v1032_v33, %v1026_v35 }
 0xedf   :  { %1036 = vrot.lane.b32.xlu2 %v1034_v36, %s1532_s1 }
 0xf31   :  { %v953_v39 = vpop.permute.xlu1 %952 }
 0xf32   :  { %v1936_v50 = vadd.f32 %v953_v39, %v945_v38 }
 0xf34   :  { %1471 = vtanh.f32 %v1936_v50 }
 0xf39   :  { %v1037_v55 = vpop.permute.xlu2 %1036 }
 0xf3a   :  { %v1472_v57 = vpop.eup %1471  ;;  %v1940_v58 = vadd.f32 %v1037_v55, %v1029_v54 }
 0xf3b   :  { %958 = vrot.lane.b32.xlu0 %v1472_v57, %s1531_s24 }
 0xf3c   :  { %1473 = vtanh.f32 %v1940_v58 }
 0xf42   :  { %v1474_v34 = vpop.eup %1473 }
 0xf43   :  { %1042 = vrot.lane.b32.xlu1 %v1474_v34, %s1531_s24 }
 0xfad   :  { %v959_v60 = vpop.permute.xlu0 %958 }
 0xfae   :  { %v961_v61 = vmul.f32 %v959_v60, %v942_v20 }
 0xfb0   :  { %1049 = vrot.lane.b32.xlu2 %v961_v61, %s1532_s1 }
 0xfb5   :  { %v1043_v62 = vpop.permute.xlu1 %1042 }
 0xfb6   :  { %v1045_v63 = vmul.f32 %v1043_v62, %v1026_v35 }
 0xfb8   :  { %1133 = vrot.lane.b32.xlu0 %v1045_v63, %s1532_s1 }
0x100a   :  { %v1050_v1 = vpop.permute.xlu2 %1049 }
0x100b   :  { %1354 = vmatmul.msk.f32.vlgmr.msrb.gmra.mxu3 %vm169_vm4, %v1050_v1  ;;  %1356 = vmatmul.msk.f32.vlgmr.msra.gmra.mxu1 %vm169_vm4, %v1050_v1 }
0x102a   :  { %v1134_v2 = vpop.permute.xlu0 %1133 }
0x102b   :  { %1357 = vmatmul.msk.f32.vlgmr.msra.gmra.mxu2 %vm169_vm4, %v1134_v2 }
0x1088   :  { %v1128_v59 = vpop.f32.mrf.mxu1 }
0x1089   :  { %v1131_v6 = vadd.f32 %v1958_v5, %v1128_v59 }
0x108e   :  { %v1070_v3 = vpop.f32.mrf.mxu3 }
0x108f   :  { %v1073_v4 = vadd.f32 %v1070_v3, %v112_v37 }
0x1091   :  { %1475 = vtanh.f32 %v1073_v4  ;;  %v1355_v46 = vmul.f32 -1.442695, %v1073_v4 }
0x1097   :  { %v1476_v0 = vpop.eup %1475 }
0x1098   :  { %1096 = vrot.lane.b32.xlu1 %v1476_v0, %s1531_s24 }
0x10ae   :  { %v1154_v40 = vpop.f32.mrf.mxu2 }
0x10af   :  { %v1157_v43 = vadd.f32 %v1154_v40, %v1131_v6 }
0x10b1   :  { %1477 = vtanh.f32 %v1157_v43  ;;  %v1358_v41 = vmul.f32 -1.442695, %v1157_v43 }
0x10b2   :  { %1479 = vpow2.f32 %v1355_v46 }
0x10b3   :  { %1481 = vpow2.f32 %v1358_v41 }
0x10b7   :  { %v1478_v49 = vpop.eup %1477 }
0x10b8   :  { %1180 = vrot.lane.b32.xlu2 %v1478_v49, %s1531_s24  ;;  %v1480_v45 = vpop.eup %1479 }
0x10b9   :  { %v1077_v51 = vadd.f32 1.0, %v1480_v45  ;;  %v1482_v42 = vpop.eup %1481 }
0x10ba   :  { %v1161_v48 = vadd.f32 1.0, %v1482_v42  ;;  %v1287_v42 = vld [vmem:[#allocation3 + $0x18] sm:$0xff] }
0x10bb   :  { %1483 = vrcp.f32 %v1077_v51  ;;  %v1089_v12 = vand.u32 2147483648, %v1077_v51  ;;  %vm1083_vm9 = vweird.f32 %v1077_v51  ;;  %v1087_v13 = vand.u32 2147483647, %v1077_v51  ;;  %1309 = vmatpush.msrb.mxu2 %v1287_v42 }
0x10bc   :  { %1485 = vrcp.f32 %v1161_v48  ;;  %v1173_v20 = vand.u32 2147483648, %v1161_v48  ;;  %vm1167_vm13 = vweird.f32 %v1161_v48  ;;  %v1171_v21 = vand.u32 2147483647, %v1161_v48 }
0x10bd   :  { %v1090_v17 = vor.u32 1.1754944e-38, %v1089_v12  ;;  %vm1088_vm11 = vcmp.eq.f32.partialorder %v1087_v13, 8.507059e+37 }
0x10be   :  { %v1174_v23 = vor.u32 1.1754944e-38, %v1173_v20  ;;  %vm1172_vm15 = vcmp.eq.f32.partialorder %v1171_v21, 8.507059e+37 }
0x10c1   :  { %v1484_v44 = vpop.eup %1483 }
0x10c2   :  { %v1079_v52 = vmul.f32 %v1484_v44, %v1077_v51  ;;  %v1486_v47 = vpop.eup %1485  ;;  %vm1084_vm8 = vweird.f32 %v1484_v44 }
0x10c3   :  { %v1163_v9 = vmul.f32 %v1486_v47, %v1161_v48  ;;  %vm1085_vm10 = vmor %vm1083_vm9, %vm1084_vm8  ;;  %vm1168_vm12 = vweird.f32 %v1486_v47  ;;  %v1286_v48 = vld [vmem:[#allocation3 + $0x10] sm:$0xff] }
0x10c4   :  { %v1080_v7 = vsub.f32 1.0, %v1079_v52  ;;  %vm1169_vm14 = vmor %vm1167_vm13, %vm1168_vm12  ;;  %1310 = vmatpush.msrb.mxu2 %v1286_v48  ;;  %v1284_v52 = vld [vmem:[#allocation3] sm:$0xff] }
0x10c5   :  { %v1164_v11 = vsub.f32 1.0, %v1163_v9  ;;  %v1370_v9 = vld [vmem:[%s1991_s7] ss:$0 sm:$0xff] }
0x10c6   :  { %v1081_v8 = vmul.f32 %v1484_v44, %v1080_v7 }
0x10c7   :  { %v1165_v14 = vmul.f32 %v1486_v47, %v1164_v11 }
0x10c8   :  { %v1082_v10 = vadd.f32 %v1484_v44, %v1081_v8 }
0x10c9   :  { %v1166_v19 = vadd.f32 %v1486_v47, %v1165_v14 }
0x10ca   :  { %v1086_v56 = vsel %vm1085_vm10, %v1484_v44, %v1082_v10  ;;  %v1285_v44 = vld [vmem:[#allocation3 + $0x8] sm:$0xff] }
0x10cb   :  { %v1091_v16 = vsel %vm1088_vm11, %v1090_v17, %v1086_v56  ;;  %v1170_v22 = vsel %vm1169_vm14, %v1486_v47, %v1166_v19  ;;  %1311 = vmatpush.msrb.mxu2 %v1285_v44 }
0x10cc   :  { %v1175_v25 = vsel %vm1172_vm15, %v1174_v23, %v1170_v22  ;;  %v1094_v27 = vmul.f32 %v1091_v16, %v1936_v50 }
0x10cd   :  { %v1178_v31 = vmul.f32 %v1175_v25, %v1940_v58  ;;  %1312 = vmatpush.msrb.mxu2 %v1284_v52 }
0x110a   :  { %v1097_v15 = vpop.permute.xlu1 %1096 }
0x110b   :  { %v1099_v18 = vmul.f32 %v1097_v15, %v1091_v16 }
0x110d   :  { %1101 = vrot.lane.b32.xlu0 %v1099_v18, %s1532_s1 }
0x1112   :  { %v1181_v24 = vpop.permute.xlu2 %1180 }
0x1113   :  { %v1183_v26 = vmul.f32 %v1181_v24, %v1175_v25 }
0x1115   :  { %1185 = vrot.lane.b32.xlu1 %v1183_v26, %s1532_s1 }
0x117f   :  { %v1102_v28 = vpop.permute.xlu0 %1101 }
0x1180   :  { %v1104_v29 = vadd.f32 %v1102_v28, %v1094_v27 }
0x1182   :  { %1487 = vtanh.f32 %v1104_v29 }
0x1187   :  { %v1186_v32 = vpop.permute.xlu1 %1185 }
0x1188   :  { %v1488_v33 = vpop.eup %1487  ;;  %v1188_v35 = vadd.f32 %v1186_v32, %v1178_v31 }
0x1189   :  { %1107 = vrot.lane.b32.xlu2 %v1488_v33, %s1531_s24 }
0x118a   :  { %1489 = vtanh.f32 %v1188_v35 }
0x1190   :  { %v1490_v36 = vpop.eup %1489 }
0x1191   :  { %1191 = vrot.lane.b32.xlu0 %v1490_v36, %s1531_s24 }
0x11e3   :  { %v1108_v38 = vpop.permute.xlu2 %1107 }
0x11e4   :  { %v1110_v39 = vmul.f32 %v1108_v38, %v1091_v16 }
0x11e6   :  { %1196 = vrot.lane.b32.xlu1 %v1110_v39, %s1532_s1 }
0x1203   :  { %v1192_v54 = vpop.permute.xlu0 %1191 }
0x1204   :  { %v1194_v50 = vmul.f32 %v1192_v54, %v1175_v25 }
0x1206   :  { %1222 = vrot.lane.b32.xlu2 %v1194_v50, %s1532_s1 }
0x1258   :  { %v1197_v55 = vpop.permute.xlu1 %1196 }
0x1259   :  { %1359 = vmatmul.msk.f32.vlgmr.msra.gmra.mxu3 %vm169_vm4, %v1197_v55 }
0x1260   :  { %v1223_v57 = vpop.permute.xlu2 %1222 }
0x1261   :  { %1360 = vmatmul.msk.f32.vlgmr.msrb.gmra.mxu1 %vm169_vm4, %v1223_v57 }
0x12dc   :  { %v1217_v58 = vpop.f32.mrf.mxu3 }
0x12dd   :  { %v1220_v34 = vadd.f32 %v1958_v5, %v1217_v58 }
0x12de   :  { %v1243_v60 = vpop.f32.mrf.mxu1 }
0x12df   :  { %v1246_v61 = vadd.f32 %v1243_v60, %v1220_v34 }
0x12e1   :  { %1491 = vtanh.f32 %v1246_v61  ;;  %v1361_v63 = vmul.f32 -1.442695, %v1246_v61 }
0x12e3   :  { %1493 = vpow2.f32 %v1361_v63 }
0x12e7   :  { %v1492_v62 = vpop.eup %1491 }
0x12e8   :  { %1269 = vrot.lane.b32.xlu0 %v1492_v62, %s1531_s24 }
0x12e9   :  { %v1494_v53 = vpop.eup %1493 }
0x12ea   :  { %v1250_v1 = vadd.f32 1.0, %v1494_v53 }
0x12ec   :  { %1495 = vrcp.f32 %v1250_v1  ;;  %v1262_v0 = vand.u32 2147483648, %v1250_v1  ;;  %vm1256_vm1 = vweird.f32 %v1250_v1  ;;  %v1260_v59 = vand.u32 2147483647, %v1250_v1 }
0x12ee   :  { %v1263_v6 = vor.u32 1.1754944e-38, %v1262_v0  ;;  %vm1261_vm3 = vcmp.eq.f32.partialorder %v1260_v59, 8.507059e+37 }
0x12f2   :  { %v1496_v2 = vpop.eup %1495 }
0x12f3   :  { %v1252_v30 = vmul.f32 %v1496_v2, %v1250_v1  ;;  %vm1257_vm0 = vweird.f32 %v1496_v2 }
0x12f4   :  { %vm1258_vm2 = vmor %vm1256_vm1, %vm1257_vm0 }
0x12f5   :  { %v1253_v37 = vsub.f32 1.0, %v1252_v30 }
0x12f7   :  { %v1254_v3 = vmul.f32 %v1496_v2, %v1253_v37 }
0x12f9   :  { %v1255_v4 = vadd.f32 %v1496_v2, %v1254_v3 }
0x12fb   :  { %v1259_v5 = vsel %vm1258_vm2, %v1496_v2, %v1255_v4 }
0x12fc   :  { %v1264_v43 = vsel %vm1261_vm3, %v1263_v6, %v1259_v5 }
0x12fd   :  { %v1267_v46 = vmul.f32 %v1264_v43, %v1188_v35 }
0x135a   :  { %v1270_v40 = vpop.permute.xlu0 %1269 }
0x135b   :  { %v1272_v49 = vmul.f32 %v1270_v40, %v1264_v43 }
0x135d   :  { %1274 = vrot.lane.b32.xlu1 %v1272_v49, %s1532_s1 }
0x13cf   :  { %v1275_v41 = vpop.permute.xlu1 %1274 }
0x13d0   :  { %v1277_v45 = vadd.f32 %v1275_v41, %v1267_v46 }
0x13d2   :  { %1497 = vtanh.f32 %v1277_v45 }
0x13d8   :  { %v1498_v51 = vpop.eup %1497 }
0x13d9   :  { %1280 = vrot.lane.b32.xlu2 %v1498_v51, %s1531_s24 }
0x1433   :  { %v1281_v7 = vpop.permute.xlu2 %1280 }
0x1434   :  { %v1283_v47 = vmul.f32 %v1281_v7, %v1264_v43 }
0x1436   :  { %1293 = vrot.lane.b32.xlu0 %v1283_v47, %s1532_s1 }
0x14a8   :  { %v1294_v8 = vpop.permute.xlu0 %1293 }
0x14a9   :  { %1362 = vmatmul.msk.f32.vlgmr.msrb.gmra.mxu2 %vm169_vm4, %v1294_v8 }
0x152c   :  { %v1314_v10 = vpop.f32.mrf.mxu2 }
0x152d   :  { %v1315_v11 = vadd.f32 %v1370_v9, %v1314_v10 }
0x152f   :  { %1317 = vst [vmem:[%s1992_s8] sm:$0xff] %v1315_v11 }
0x1530   :  { %1322 = vsyncpa [#allocation4], 1 }

</bundles_post_ra>
